<compile_context>
chip_gen: v6e
topology: v6e:2x2x1
jax: 0.10.0
libtpu: 0.0.40
codegen_flags: <defaults>
</compile_context>

<pallas_src>
import jax
import jax.numpy as jnp
from jax.experimental import pallas as pl
from jax.experimental.pallas import tpu as pltpu

_LANES = 128


def _round_up(n, m):
    return ((n + m - 1) // m) * m


def _vmem_capacity_bytes():
    try:
        return int(pltpu.get_tpu_info().vmem_capacity_bytes)
    except Exception:
        return 128 * 1024 * 1024


def _select_tile_k(nk_pad, tile_b, h, tile_k_req, vmem_cap):
    """Pick a lane-aligned chunk of the N*K feature axis.

    Returns (tile_k, nk_run) with nk_run % tile_k == 0 and nk_run >= nk_pad."""
    # Budget for the double-buffered bf16 layer-0 streams (a_feat tile + w0a chunk):
    # ~48 MiB on 128 MiB chips (v5e/v6e), ~20 MiB on v7x's 64 MiB VMEM.
    budget = 48 * 1024 * 1024 if vmem_cap >= 100 * 1024 * 1024 else 20 * 1024 * 1024
    tk_max = budget // (2 * 2 * (tile_b + h))          # 2 buffers x 2 bytes (bf16)
    tk_max = max(_LANES, (tk_max // _LANES) * _LANES)
    # Collapse the k-grid entirely when the whole feature axis fits the budget.
    if nk_pad <= tk_max:
        return nk_pad, nk_pad
    tile_k = min(max(_LANES, (tile_k_req // _LANES) * _LANES), tk_max)
    # Prefer an exact divisor of nk_pad close to the target ...
    best = _LANES
    for cand in range(tile_k, _LANES - 1, -_LANES):
        if nk_pad % cand == 0:
            best = cand
            break
    if best >= max(512, tile_k // 2):
        return best, nk_pad
    # ... otherwise pad NK up to a multiple of tile_k (zero rows in w0a are free).
    return tile_k, _round_up(nk_pad, tile_k)


# ----------------------------------- kernel -----------------------------------
def _apoly_mlp_kernel(a_ref, x_ref,
                      w0a_ref, w0x_ref, b0_ref,
                      w1_ref, b1_ref, w2_ref, b2_ref,
                      w3t_ref, b3_ref,
                      out_ref, acc_ref):
    k = pl.program_id(1)

    @pl.when(k == 0)
    def _():
        acc_ref[...] = jnp.zeros_like(acc_ref)

    # Layer-0 partial matmul over this chunk of the N*K adjacency features
    # (the src*tar product was fused into the single streamed a_feat input).
    acc_ref[...] += jnp.dot(a_ref[...], w0a_ref[...],
                            preferred_element_type=jnp.float32)

    @pl.when(k == pl.num_programs(1) - 1)
    def _():
        # Node-feature part of layer 0 + bias + ReLU (only after the full k-sum).
        h = acc_ref[...] + jnp.dot(x_ref[...], w0x_ref[...],
                                   preferred_element_type=jnp.float32)
        h = jnp.maximum(h + b0_ref[...], 0.0)
        # TODO(synk): nn.Dropout is identity here (inference / eval semantics).

        h = h.astype(jnp.bfloat16)
        h = jnp.maximum(
            jnp.dot(h, w1_ref[...], preferred_element_type=jnp.float32) + b1_ref[...],
            0.0).astype(jnp.bfloat16)
        h = jnp.maximum(
            jnp.dot(h, w2_ref[...], preferred_element_type=jnp.float32) + b2_ref[...],
            0.0).astype(jnp.bfloat16)

        # Output layer as (1,H) @ (TB,H)^T -> (1, TB): the batch axis lands on
        # lanes, so the sigmoid result is one unmasked lane-dense row store.
        z = jax.lax.dot_general(w3t_ref[...], h,
                                dimension_numbers=(((1,), (1,)), ((), ())),
                                preferred_element_type=jnp.float32)
        out_ref[...] = jax.nn.sigmoid(z + b3_ref[0, 0])


# --------------------------- one-time model preparation ---------------------------
def prepare_apoly_mlp(A_powers, params, x, *, compute_dtype=jnp.bfloat16):
    """Mirrors __init__: concat adjacency powers once, pad N*K to a lane multiple,
    split / transpose weights, cast the heavy streams to the compute dtype."""
    (w0, b0), (w1, b1), (w2, b2), (w3, b3) = params
    num_nodes = A_powers[0].shape[0]
    K = len(A_powers)
    NK = num_nodes * K
    D = x.shape[1]
    H = w1.shape[0]
    NK_pad = _round_up(NK, _LANES)

    # NOTE: adjacency-power counts above 256 are not exactly representable in
    # bf16; pass compute_dtype=jnp.float32 for dense graphs / large K.
    A_cat = jnp.concatenate(A_powers, axis=1)                      # (N, NK), once
    A_cat = jnp.pad(A_cat, ((0, 0), (0, NK_pad - NK))).astype(compute_dtype)
    w0a = jnp.pad(w0[:NK, :], ((0, NK_pad - NK), (0, 0))).astype(compute_dtype)
    w0x = w0[NK:, :].astype(compute_dtype)

    return dict(
        A_cat=A_cat,
        x=x.astype(compute_dtype),
        w0a=w0a, w0x=w0x, b0=b0.astype(jnp.float32),
        w1=w1.astype(compute_dtype), b1=b1.astype(jnp.float32),
        w2=w2.astype(compute_dtype), b2=b2.astype(jnp.float32),
        w3t=w3.T.astype(compute_dtype),
        b3=jnp.asarray(b3, jnp.float32).reshape(1, 1),
        dims=dict(NK=NK, NK_pad=NK_pad, D=D, H=H),
    )


# ----------------------------------- forward -----------------------------------
def apoly_mlp_forward(src, tar, prepared, *, tile_b=256, tile_k=2048):
    """Pallas implementation of APoly_MLP.forward (use_nodefeat=True, eval mode)."""
    dims = prepared["dims"]
    NK_pad, D, H = dims["NK_pad"], dims["D"], dims["H"]
    B = int(src.shape[0])

    # Batch tile: lane multiple, capped so the "parallel" batch axis keeps >= 2
    # grid steps whenever the batch allows (keeps both v7x TensorCores busy).
    tile_b = max(_LANES, (tile_b // _LANES) * _LANES)
    tile_b = min(tile_b, max(_LANES, _round_up(max(B // 2, 1), _LANES)))
    B_pad = _round_up(B, tile_b)
    if B_pad != B:
        pad = jnp.zeros((B_pad - B,), dtype=src.dtype)
        src = jnp.concatenate([src, pad])
        tar = jnp.concatenate([tar, pad])

    vmem_cap = _vmem_capacity_bytes()
    tile_k, NK_run = _select_tile_k(NK_pad, tile_b, H, tile_k, vmem_cap)
    grid = (B_pad // tile_b, NK_run // tile_k)

    # ---- glue: fused gather + src*tar product -> ONE stream per input class ----
    # TODO(synk): fuse the gather into the kernel (scalar-prefetch src/tar + per-row
    # DMA from an HBM/VMEM-resident A_cat) to kill this HBM materialize/reload.
    A_cat, x = prepared["A_cat"], prepared["x"]
    a_feat = A_cat[src] * A_cat[tar]                     # (B_pad, NK_pad) bf16
    x_feat = x[src] * x[tar]                             # (B_pad, D)      bf16
    w0a = prepared["w0a"]
    if NK_run != NK_pad:
        # TODO(synk): hoist this w0a padding into prepare_apoly_mlp (once per model).
        a_feat = jnp.pad(a_feat, ((0, 0), (0, NK_run - NK_pad)))
        w0a = jnp.pad(w0a, ((0, NK_run - NK_pad), (0, 0)))

    vmem_limit = min(96 * 1024 * 1024, int(0.75 * vmem_cap))

    out = pl.pallas_call(
        _apoly_mlp_kernel,
        out_shape=jax.ShapeDtypeStruct((1, B_pad), jnp.float32),
        grid=grid,
        in_specs=[
            pl.BlockSpec((tile_b, tile_k), lambda i, k: (i, k)),   # a_feat
            pl.BlockSpec((tile_b, D), lambda i, k: (i, 0)),        # x_feat
            pl.BlockSpec((tile_k, H), lambda i, k: (k, 0)),        # w0a chunk
            pl.BlockSpec((D, H), lambda i, k: (0, 0)),             # w0x
            pl.BlockSpec((1, H), lambda i, k: (0, 0)),             # b0
            pl.BlockSpec((H, H), lambda i, k: (0, 0)),             # w1
            pl.BlockSpec((1, H), lambda i, k: (0, 0)),             # b1
            pl.BlockSpec((H, H), lambda i, k: (0, 0)),             # w2
            pl.BlockSpec((1, H), lambda i, k: (0, 0)),             # b2
            pl.BlockSpec((1, H), lambda i, k: (0, 0)),             # w3^T
            pl.BlockSpec(memory_space=pltpu.MemorySpace.SMEM),     # b3 (scalar)
        ],
        out_specs=pl.BlockSpec((1, tile_b), lambda i, k: (0, i)),
        scratch_shapes=[pltpu.VMEM((tile_b, H), jnp.float32)],     # layer-0 accumulator
        compiler_params=pltpu.CompilerParams(
            dimension_semantics=("parallel", "arbitrary"),
            vmem_limit_bytes=vmem_limit),
    )(a_feat, x_feat,
      w0a, prepared["w0x"], prepared["b0"],
      prepared["w1"], prepared["b1"],
      prepared["w2"], prepared["b2"],
      prepared["w3t"], prepared["b3"])

    return out.reshape(-1)[:B]                  # matches torch .view(-1)


# ----------------------------- reference (plain JAX) -----------------------------
def apoly_mlp_reference(src, tar, x, A_powers, params, *, compute_dtype=jnp.float32):
    (w0, b0), (w1, b1), (w2, b2), (w3, b3) = params
    c = compute_dtype
    A_cat = jnp.concatenate(A_powers, axis=1).astype(c)
    xc = x.astype(c)
    feat = jnp.concatenate([A_cat[src] * A_cat[tar], xc[src] * xc[tar]], axis=1)
    h = jnp.dot(feat, w0.astype(c), preferred_element_type=jnp.float32) + b0
    h = jax.nn.relu(h).astype(c)
    h = jnp.dot(h, w1.astype(c), preferred_element_type=jnp.float32) + b1
    h = jax.nn.relu(h).astype(c)
    h = jnp.dot(h, w2.astype(c), preferred_element_type=jnp.float32) + b2
    h = jax.nn.relu(h).astype(c)
    z = jnp.dot(h, w3.astype(c), preferred_element_type=jnp.float32) + b3
    return jax.nn.sigmoid(z).reshape(-1)


# ----------------------------- deterministic setup -----------------------------
def _linear_init(key, fan_in, fan_out):
    """PyTorch nn.Linear default init: U(-1/sqrt(fan_in), 1/sqrt(fan_in))."""
    kw, kb = jax.random.split(key)
    bound = 1.0 / float(fan_in) ** 0.5
    w = jax.random.uniform(kw, (fan_in, fan_out), jnp.float32, -bound, bound)
    b = jax.random.uniform(kb, (1, fan_out), jnp.float32, -bound, bound)
    return w, b


if __name__ == "__main__":
    # Small, module-consistent shapes (batch chosen so the grid has 2 "parallel"
    # batch tiles at tile_b=256 and the batch-padding path is exercised).
    num_nodes = 16     # N
    dim_feat = 8       # node feature dim
    hidden_dim = 32    # hidden_channels
    K = 2              # number of adjacency powers
    batch = 500        # number of (src, tar) edge queries

    key = jax.random.PRNGKey(0)
    k_a, k_x, k_src, k_tar, k0, k1, k2, k3 = jax.random.split(key, 8)

    # Synthetic symmetric 0/1 adjacency (stands in for A.toarray()).
    A_rand = jax.random.uniform(k_a, (num_nodes, num_nodes))
    A = (A_rand < 0.3).astype(jnp.float32)
    A = jnp.maximum(A, A.T)

    # A_powers = [A, A@A, ..., A^K]  (setup glue, mirrors __init__).
    A_powers = [A]
    for _ in range(1, K):
        A_powers.append(A_powers[-1] @ A)

    # Node features and edge index lists.
    x = jax.random.normal(k_x, (num_nodes, dim_feat), jnp.float32)
    src = jax.random.randint(k_src, (batch,), 0, num_nodes)
    tar = jax.random.randint(k_tar, (batch,), 0, num_nodes)

    # MLP parameters (use_nodefeat=True -> n_in = N*K + dim_feat).
    n_in = num_nodes * K + dim_feat
    params = (
        _linear_init(k0, n_in, hidden_dim),
        _linear_init(k1, hidden_dim, hidden_dim),
        _linear_init(k2, hidden_dim, hidden_dim),
        _linear_init(k3, hidden_dim, 1),
    )

    prepared = prepare_apoly_mlp(A_powers, params, x)   # one-time setup

    out = apoly_mlp_forward(src, tar, prepared, tile_b=256, tile_k=2048)
    out = jax.block_until_ready(out)

    ref_bf16 = jax.block_until_ready(
        apoly_mlp_reference(src, tar, x, A_powers, params, compute_dtype=jnp.bfloat16))
    ref_fp32 = jax.block_until_ready(
        apoly_mlp_reference(src, tar, x, A_powers, params, compute_dtype=jnp.float32))

    assert out.shape == (batch,), out.shape
    assert jnp.allclose(out, ref_bf16, atol=5e-3, rtol=5e-3), (
        float(jnp.max(jnp.abs(out - ref_bf16))))
    assert jnp.allclose(out, ref_fp32, atol=5e-2, rtol=5e-2), (
        float(jnp.max(jnp.abs(out - ref_fp32))))

    print("KERNEL_OK")
</pallas_src>

<mosaic_0001>
module attributes {stable_mosaic.version = 11 : i64} {
  func.func @_apoly_mlp_kernel(%arg0: i32, %arg1: i32, %arg2: memref<256x128xbf16, #tpu.memory_space<vmem>>, %arg3: memref<256x8xbf16, #tpu.memory_space<vmem>>, %arg4: memref<128x32xbf16, #tpu.memory_space<vmem>>, %arg5: memref<8x32xbf16, #tpu.memory_space<vmem>>, %arg6: memref<1x32xf32, #tpu.memory_space<vmem>>, %arg7: memref<32x32xbf16, #tpu.memory_space<vmem>>, %arg8: memref<1x32xf32, #tpu.memory_space<vmem>>, %arg9: memref<32x32xbf16, #tpu.memory_space<vmem>>, %arg10: memref<1x32xf32, #tpu.memory_space<vmem>>, %arg11: memref<1x32xbf16, #tpu.memory_space<vmem>>, %arg12: memref<1x1xf32, #tpu.memory_space<smem>>, %arg13: memref<1x256xf32, #tpu.memory_space<vmem>>, %arg14: memref<256x32xf32, #tpu.memory_space<vmem>>) attributes {dimension_semantics = [#tpu.dimension_semantics<parallel>, #tpu.dimension_semantics<arbitrary>], iteration_bounds = array<i64: 2, 1>, scalar_prefetch = 0 : i64, scratch_operands = 1 : i64, tpu.core_type = #tpu.core_type<tc>, window_params = [{transform_indices = @transform_0, window_bounds = array<i64: 256, 128>}, {transform_indices = @transform_1, window_bounds = array<i64: 256, 8>}, {transform_indices = @transform_2, window_bounds = array<i64: 128, 32>}, {pipeline_mode = #tpu.pipeline_mode<synchronous>, transform_indices = @transform_3, window_bounds = array<i64: 8, 32>}, {pipeline_mode = #tpu.pipeline_mode<synchronous>, transform_indices = @transform_4, window_bounds = array<i64: 1, 32>}, {pipeline_mode = #tpu.pipeline_mode<synchronous>, transform_indices = @transform_5, window_bounds = array<i64: 32, 32>}, {pipeline_mode = #tpu.pipeline_mode<synchronous>, transform_indices = @transform_6, window_bounds = array<i64: 1, 32>}, {pipeline_mode = #tpu.pipeline_mode<synchronous>, transform_indices = @transform_7, window_bounds = array<i64: 32, 32>}, {pipeline_mode = #tpu.pipeline_mode<synchronous>, transform_indices = @transform_8, window_bounds = array<i64: 1, 32>}, {pipeline_mode = #tpu.pipeline_mode<synchronous>, transform_indices = @transform_9, window_bounds = array<i64: 1, 32>}, {transform_indices = @transform_10, window_bounds = array<i64: 1, 1>}, {transform_indices = @transform_11, window_bounds = array<i64: 1, 256>}]} {
    %c0_i32 = arith.constant 0 : i32
    %0 = arith.cmpi eq, %arg1, %c0_i32 : i32
    %1 = arith.extui %0 : i1 to i32
    %c0_i32_0 = arith.constant 0 : i32
    %2 = arith.cmpi ne, %1, %c0_i32_0 : i32
    scf.if %2 {
      %cst_10 = arith.constant 0.000000e+00 : f32
      %12 = vector.broadcast %cst_10 : f32 to vector<256x32xf32>
      %c0_11 = arith.constant 0 : index
      %c0_12 = arith.constant 0 : index
      %13 = vector.load %arg14[%c0_11, %c0_12] : memref<256x32xf32, #tpu.memory_space<vmem>>, vector<256x32xf32>
      tpu.vector_store %arg14[%c0_11, %c0_12], %12 {strides = array<i32>} : memref<256x32xf32, #tpu.memory_space<vmem>>, vector<256x32xf32>,
    } else {
    }
    %c0 = arith.constant 0 : index
    %c0_1 = arith.constant 0 : index
    %3 = vector.load %arg14[%c0, %c0_1] : memref<256x32xf32, #tpu.memory_space<vmem>>, vector<256x32xf32>
    %c0_2 = arith.constant 0 : index
    %c0_3 = arith.constant 0 : index
    %4 = vector.load %arg2[%c0_2, %c0_3] : memref<256x128xbf16, #tpu.memory_space<vmem>>, vector<256x128xbf16>
    %c0_4 = arith.constant 0 : index
    %c0_5 = arith.constant 0 : index
    %5 = vector.load %arg4[%c0_4, %c0_5] : memref<128x32xbf16, #tpu.memory_space<vmem>>, vector<128x32xbf16>
    %cst = arith.constant dense<0.000000e+00> : vector<256x32xf32>
    %6 = tpu.matmul %4, %5, %cst {dimension_numbers = #tpu.dot_dimension_numbers<[1], [0], [0], [1], [0, 0, 1, 1], [], []>} : vector<256x128xbf16>, vector<128x32xbf16>, vector<256x32xf32> -> vector<256x32xf32>
    %7 = arith.addf %3, %6 : vector<256x32xf32>
    %c0_6 = arith.constant 0 : index
    %c0_7 = arith.constant 0 : index
    %8 = vector.load %arg14[%c0_6, %c0_7] : memref<256x32xf32, #tpu.memory_space<vmem>>, vector<256x32xf32>
    tpu.vector_store %arg14[%c0_6, %c0_7], %7 {strides = array<i32>} : memref<256x32xf32, #tpu.memory_space<vmem>>, vector<256x32xf32>,
    %c0_i32_8 = arith.constant 0 : i32
    %9 = arith.cmpi eq, %arg1, %c0_i32_8 : i32
    %10 = arith.extui %9 : i1 to i32
    %c0_i32_9 = arith.constant 0 : i32
    %11 = arith.cmpi ne, %10, %c0_i32_9 : i32
    scf.if %11 {
      %c0_10 = arith.constant 0 : index
      %c0_11 = arith.constant 0 : index
      %12 = vector.load %arg14[%c0_10, %c0_11] : memref<256x32xf32, #tpu.memory_space<vmem>>, vector<256x32xf32>
      %c0_12 = arith.constant 0 : index
      %c0_13 = arith.constant 0 : index
      %13 = vector.load %arg3[%c0_12, %c0_13] : memref<256x8xbf16, #tpu.memory_space<vmem>>, vector<256x8xbf16>
      %c0_14 = arith.constant 0 : index
      %c0_15 = arith.constant 0 : index
      %14 = vector.load %arg5[%c0_14, %c0_15] : memref<8x32xbf16, #tpu.memory_space<vmem>>, vector<8x32xbf16>
      %cst_16 = arith.constant dense<0.000000e+00> : vector<256x32xf32>
      %15 = tpu.matmul %13, %14, %cst_16 {dimension_numbers = #tpu.dot_dimension_numbers<[1], [0], [0], [1], [0, 0, 1, 1], [], []>} : vector<256x8xbf16>, vector<8x32xbf16>, vector<256x32xf32> -> vector<256x32xf32>
      %16 = arith.addf %12, %15 : vector<256x32xf32>
      %c0_17 = arith.constant 0 : index
      %c0_18 = arith.constant 0 : index
      %17 = vector.load %arg6[%c0_17, %c0_18] : memref<1x32xf32, #tpu.memory_space<vmem>>, vector<1x32xf32>
      %18 = vector.broadcast %17 : vector<1x32xf32> to vector<256x32xf32>
      %19 = arith.addf %16, %18 : vector<256x32xf32>
      %cst_19 = arith.constant 0.000000e+00 : f32
      %20 = vector.broadcast %cst_19 : f32 to vector<256x32xf32>
      %21 = arith.maximumf %19, %20 : vector<256x32xf32>
      %22 = arith.truncf %21 : vector<256x32xf32> to vector<256x32xbf16>
      %c0_20 = arith.constant 0 : index
      %c0_21 = arith.constant 0 : index
      %23 = vector.load %arg7[%c0_20, %c0_21] : memref<32x32xbf16, #tpu.memory_space<vmem>>, vector<32x32xbf16>
      %cst_22 = arith.constant dense<0.000000e+00> : vector<256x32xf32>
      %24 = tpu.matmul %22, %23, %cst_22 {dimension_numbers = #tpu.dot_dimension_numbers<[1], [0], [0], [1], [0, 0, 1, 1], [], []>} : vector<256x32xbf16>, vector<32x32xbf16>, vector<256x32xf32> -> vector<256x32xf32>
      %c0_23 = arith.constant 0 : index
      %c0_24 = arith.constant 0 : index
      %25 = vector.load %arg8[%c0_23, %c0_24] : memref<1x32xf32, #tpu.memory_space<vmem>>, vector<1x32xf32>
      %26 = vector.broadcast %25 : vector<1x32xf32> to vector<256x32xf32>
      %27 = arith.addf %24, %26 : vector<256x32xf32>
      %cst_25 = arith.constant 0.000000e+00 : f32
      %28 = vector.broadcast %cst_25 : f32 to vector<256x32xf32>
      %29 = arith.maximumf %27, %28 : vector<256x32xf32>
      %30 = arith.truncf %29 : vector<256x32xf32> to vector<256x32xbf16>
      %c0_26 = arith.constant 0 : index
      %c0_27 = arith.constant 0 : index
      %31 = vector.load %arg9[%c0_26, %c0_27] : memref<32x32xbf16, #tpu.memory_space<vmem>>, vector<32x32xbf16>
      %cst_28 = arith.constant dense<0.000000e+00> : vector<256x32xf32>
      %32 = tpu.matmul %30, %31, %cst_28 {dimension_numbers = #tpu.dot_dimension_numbers<[1], [0], [0], [1], [0, 0, 1, 1], [], []>} : vector<256x32xbf16>, vector<32x32xbf16>, vector<256x32xf32> -> vector<256x32xf32>
      %c0_29 = arith.constant 0 : index
      %c0_30 = arith.constant 0 : index
      %33 = vector.load %arg10[%c0_29, %c0_30] : memref<1x32xf32, #tpu.memory_space<vmem>>, vector<1x32xf32>
      %34 = vector.broadcast %33 : vector<1x32xf32> to vector<256x32xf32>
      %35 = arith.addf %32, %34 : vector<256x32xf32>
      %cst_31 = arith.constant 0.000000e+00 : f32
      %36 = vector.broadcast %cst_31 : f32 to vector<256x32xf32>
      %37 = arith.maximumf %35, %36 : vector<256x32xf32>
      %38 = arith.truncf %37 : vector<256x32xf32> to vector<256x32xbf16>
      %c0_32 = arith.constant 0 : index
      %c0_33 = arith.constant 0 : index
      %39 = vector.load %arg11[%c0_32, %c0_33] : memref<1x32xbf16, #tpu.memory_space<vmem>>, vector<1x32xbf16>
      %cst_34 = arith.constant dense<0.000000e+00> : vector<1x256xf32>
      %40 = tpu.matmul %39, %38, %cst_34 {dimension_numbers = #tpu.dot_dimension_numbers<[1], [1], [0], [0], [0, 0, 1, 0], [], []>} : vector<1x32xbf16>, vector<256x32xbf16>, vector<1x256xf32> -> vector<1x256xf32>
      %c0_35 = arith.constant 0 : index
      %c0_36 = arith.constant 0 : index
      %41 = memref.load %arg12[%c0_35, %c0_36] : memref<1x1xf32, #tpu.memory_space<smem>>
      %42 = vector.broadcast %41 : f32 to vector<1x256xf32>
      %43 = arith.addf %40, %42 : vector<1x256xf32>
      %44 = arith.negf %43 : vector<1x256xf32>
      %45 = math.exp %44 : vector<1x256xf32>
      %cst_37 = arith.constant 1.000000e+00 : f32
      %46 = vector.broadcast %cst_37 : f32 to vector<1x256xf32>
      %47 = arith.addf %46, %45 : vector<1x256xf32>
      %48 = arith.divf %46, %47 : vector<1x256xf32>
      %c0_38 = arith.constant 0 : index
      %c0_39 = arith.constant 0 : index
      %49 = vector.load %arg13[%c0_38, %c0_39] : memref<1x256xf32, #tpu.memory_space<vmem>>, vector<1x256xf32>
      tpu.vector_store %arg13[%c0_38, %c0_39], %48 {strides = array<i32>} : memref<1x256xf32, #tpu.memory_space<vmem>>, vector<1x256xf32>,
    } else {
    }
    return
  }
  func.func @transform_0(%arg0: i32, %arg1: i32) -> (i32, i32) {
    %c0_i32 = arith.constant 0 : i32
    return %arg0, %arg1 : i32, i32
  }
  func.func @transform_1(%arg0: i32, %arg1: i32) -> (i32, i32) {
    %c0_i32 = arith.constant 0 : i32
    %c0_i32_0 = arith.constant 0 : i32
    return %arg0, %c0_i32 : i32, i32
  }
  func.func @transform_2(%arg0: i32, %arg1: i32) -> (i32, i32) {
    %c0_i32 = arith.constant 0 : i32
    %c0_i32_0 = arith.constant 0 : i32
    return %arg1, %c0_i32 : i32, i32
  }
  func.func @transform_3(%arg0: i32, %arg1: i32) -> (i32, i32) {
    %c0_i32 = arith.constant 0 : i32
    %c0_i32_0 = arith.constant 0 : i32
    %c0_i32_1 = arith.constant 0 : i32
    return %c0_i32, %c0_i32_0 : i32, i32
  }
  func.func @transform_4(%arg0: i32, %arg1: i32) -> (i32, i32) {
    %c0_i32 = arith.constant 0 : i32
    %c0_i32_0 = arith.constant 0 : i32
    %c0_i32_1 = arith.constant 0 : i32
    return %c0_i32, %c0_i32_0 : i32, i32
  }
  func.func @transform_5(%arg0: i32, %arg1: i32) -> (i32, i32) {
    %c0_i32 = arith.constant 0 : i32
    %c0_i32_0 = arith.constant 0 : i32
    %c0_i32_1 = arith.constant 0 : i32
    return %c0_i32, %c0_i32_0 : i32, i32
  }
  func.func @transform_6(%arg0: i32, %arg1: i32) -> (i32, i32) {
    %c0_i32 = arith.constant 0 : i32
    %c0_i32_0 = arith.constant 0 : i32
    %c0_i32_1 = arith.constant 0 : i32
    return %c0_i32, %c0_i32_0 : i32, i32
  }
  func.func @transform_7(%arg0: i32, %arg1: i32) -> (i32, i32) {
    %c0_i32 = arith.constant 0 : i32
    %c0_i32_0 = arith.constant 0 : i32
    %c0_i32_1 = arith.constant 0 : i32
    return %c0_i32, %c0_i32_0 : i32, i32
  }
  func.func @transform_8(%arg0: i32, %arg1: i32) -> (i32, i32) {
    %c0_i32 = arith.constant 0 : i32
    %c0_i32_0 = arith.constant 0 : i32
    %c0_i32_1 = arith.constant 0 : i32
    return %c0_i32, %c0_i32_0 : i32, i32
  }
  func.func @transform_9(%arg0: i32, %arg1: i32) -> (i32, i32) {
    %c0_i32 = arith.constant 0 : i32
    %c0_i32_0 = arith.constant 0 : i32
    %c0_i32_1 = arith.constant 0 : i32
    return %c0_i32, %c0_i32_0 : i32, i32
  }
  func.func @transform_10(%arg0: i32, %arg1: i32) -> (i32, i32) {
    %c0_i32 = arith.constant 0 : i32
    %c0_i32_0 = arith.constant 0 : i32
    %c0_i32_1 = arith.constant 0 : i32
    return %c0_i32, %c0_i32_0 : i32, i32
  }
  func.func @transform_11(%arg0: i32, %arg1: i32) -> (i32, i32) {
    %c0_i32 = arith.constant 0 : i32
    %c0_i32_0 = arith.constant 0 : i32
    return %c0_i32, %arg0 : i32, i32
  }
}

</mosaic_0001>

<bundles_post_ra>
// kernel: tpu_custom_call.1
= control target key start
LH: loop header
LB: loop body
LE: loop exit
PB: predicated region body
PF: predicated region fallthrough
CT: control target
= control target key end

     0   :  { %s3379_s0 = inlined_call_operand.vmem [shape: bf16[512,128], index: 0, kind: input, shape index: {}]   ;;  %s3380_s1 = inlined_call_operand.vmem [shape: bf16[512,8], index: 1, kind: input, shape index: {}]   ;;  %s3381_s2 = inlined_call_operand.vmem [shape: bf16[128,32], index: 2, kind: input, shape index: {}]   ;;  %s3382_s3 = inlined_call_operand.vmem [shape: bf16[8,32], index: 3, kind: input, shape index: {}]   ;;  %s3383_s4 = inlined_call_operand.vmem [shape: f32[1,32], index: 4, kind: input, shape index: {}]   ;;  %s3384_s5 = inlined_call_operand.vmem [shape: bf16[32,32], index: 5, kind: input, shape index: {}]   ;;  %s3385_s6 = inlined_call_operand.vmem [shape: f32[1,32], index: 6, kind: input, shape index: {}]   ;;  %s3386_s7 = inlined_call_operand.vmem [shape: bf16[32,32], index: 7, kind: input, shape index: {}]   ;;  %s3387_s8 = inlined_call_operand.vmem [shape: f32[1,32], index: 8, kind: input, shape index: {}]   ;;  %s3388_s9 = inlined_call_operand.vmem [shape: bf16[1,32], index: 9, kind: input, shape index: {}]   ;;  %s3389_s10 = inlined_call_operand.<no memory space> [shape: f32[1,1], index: 10, kind: input, shape index: {}]   ;;  %s3390_s11 = inlined_call_operand.hbm [shape: f32[1,512], index: 11, kind: output, shape index: {}]  }
   0x1   :  { %3392 = sst [smem:[#allocation8_spill]] %s3379_s0 }
   0x2   :  { %16 = sst [smem:[#allocation3]] %s3389_s10 }
   0x3   :  { %17 = vsyncpa [#allocation5], 0 }
   0x4   :  { %19 = vsyncpa [#allocation5 + $0x1], 0  ;;  %s2853_s19 = smov 0   ;;  %s2855_s20 = smov 0  }
   0x5   :  { %s2857_s21 = smov 0   ;;  %s2859_s22 = smov 0  }
   0x6   :  { %s2861_s23 = smov 0   ;;  %s2863_s24 = smov 0  }
   0x7 LB: > { %s2227_s10 = sadd.s32 4294967295, %s2785_s24   ;;  %s2228_s25 = sadd.s32 4294967294, %s2785_s24   ;;  %s2785_s24 = sphi %s2863_s24, %s25_s24   ;;  %s2781_s23 = sphi %s2861_s23, %s3402_s23   ;;  %s2777_s22 = sphi %s2859_s22, %s3401_s22   ;;  %s2773_s21 = sphi %s2857_s21, %s3400_s21   ;;  %s2769_s20 = sphi %s2855_s20, %s3399_s20   ;;  %s2765_s19 = sphi %s2853_s19, %s3398_s19  }
   0x8   : > { %s37_s26 = sadd.s32 1, %s2781_s23  ;;  %s292_s27 = sadd.s32 1, %s2773_s21 }
   0x9   : > { %p39_p0 = scmp.ge.s32.totalorder %s37_s26, 2  ;;  %p302_p1 = scmp.ne.s32.totalorder %s2773_s21, %s2769_s20 }
   0xa   : > { %p303_p2 = scmp.eq.s32.totalorder %s2227_s10, 1  ;;  %p308_p3 = scmp.ne.s32.totalorder %s2769_s20, %s2765_s19 }
   0xb   : > { %s3404_s26 = smov (%p39_p0, %s37_s26), 0  ;;  %p309_p5 = scmp.eq.s32.totalorder %s2228_s25, 1 }
   0xc   : > { %3393 = sst [smem:[#allocation7_spill]] %s3404_s26  ;;  %p2891_p4 = por %p303_p2, %p302_p1 }
   0xd   : > { %s289_s29 = ssub.s32 %s2781_s23, %s3404_s26  ;;  %p2232_p6 = scmp.ge.s32.totalorder %s2785_s24, 1 }
   0xe   : > { %p290_p7 = scmp.eq.s32.totalorder %s289_s29, 0  ;;  %p2898_p8 = por %p309_p5, %p308_p3 }
   0xf   : > { %p381_p9 = scmp.lt.s32.totalorder %s2785_s24, 3 }
  0x10   : > { %s2904_s12 = scalar_select %p290_p7, %s2773_s21, %s292_s27  }
  0x11   : > { %p382_p10 = pnand %p2232_p6, %p381_p9 }
  0x12   : > { %s2909_s15 = sshll.u32 (!%p382_p10), %s2777_s22, 5  ;;  %s3396_s0 = sld [smem:[#allocation8_spill]] (!%p382_p10) }
  0x13   : > { %385 = sbr.rel (%p382_p10) target bundleno = 1052 (0x41c), region = 64  ;;  %p435_p11 = scmp.lt.s32.totalorder (!%p382_p10), %s2909_s15, 63 }
  0x14   : > { %s1986_s14 = sld [smem:[#allocation3]] (!%p382_p10)  ;;  %s431_s16 = sand.u32 (!%p382_p10), 1, %s2769_s20  }
  0x15   : > { %s2233_s17 = sshll.u32 (!%p382_p10), %s431_s16, 1  ;;  %s2128_s25 = scalar_lea.hbm (!%p382_p10), %s3390_s11, %s2909_s15 }
  0x16   : > { %s2789_s13 = smov (!%p382_p10), [#allocation4]  }
  0x18   : > { %v2657_v0 = vld [vmem:[%s3381_s2 + $0x38] sm:$0xff]   ;;  %v2658_v1 = vld [vmem:[%s3381_s2 + $0x30] sm:$0xff]   ;;  %s436_s18 = scalar_select %p435_p11, %s2909_s15, 63  ;;  %v2659_v2 = vld [vmem:[%s3381_s2 + $0x28] sm:$0xff]   ;;  %vm461_vm0 = vcmask 261120   ;;  %vm1141_vm1 = vcmask 1043456  }
  0x19   : > { %2437 = vmatprep.subr.bf16.mxu0 %v2657_v0  ;;  %v2660_v3 = vld [vmem:[%s3381_s2 + $0x20] sm:$0xff]   ;;  %v2787_v5 = vmov 0.0   ;;  %vm1092_vm2 = vcmask 64512   ;;  %v2661_v6 = vld [vmem:[%s3381_s2 + $0x18] sm:$0xff]   ;;  %v2662_v12 = vld [vmem:[%s3381_s2 + $0x10] sm:$0xff]  }
  0x1a   : > { %2438 = vmatpush3.bf16.msra.mxu0 %v2657_v0  ;;  %s2235_s27 = sshll.u32 %s436_s18, 2  ;;  %464 = vst.msk [vmem:[#allocation2 + $0x10] sm:$0xff] %vm461_vm0, %v2787_v5  ;;  %462 = vst.msk [vmem:[#allocation2] sm:$0xff] %vm461_vm0, %v2787_v5  ;;  %v1011_v7 = vld [vmem:[%s3382_s3] sm:$0xf]  ;;  %v2663_v13 = vld [vmem:[%s3381_s2 + $0x8] sm:$0xff]  }
  0x1b   : > { %2439 = vmatprep.subr.bf16.mxu0 %v2658_v1  ;;  %s2922_s22 = scalar_lea.vmem %s3396_s0, %s2235_s27  ;;  %s2931_s10 = scalar_lea.vmem %s3380_s1, %s2235_s27  ;;  %463 = vst.msk [vmem:[#allocation2 + $0x8] sm:$0xff] %vm461_vm0, %v2787_v5  ;;  %465 = vst.msk [vmem:[#allocation2 + $0x18] sm:$0xff] %vm461_vm0, %v2787_v5  ;;  %2591 = vmatprep.subr.msk.bf16.mxu1 %vm1141_vm1, %v1011_v7  ;;  %v1143_v8 = vsel %vm1141_vm1, %v1011_v7, 0  ;;  %v2664_v16 = vld [vmem:[%s3381_s2] sm:$0xff]   ;;  %v2697_v25 = vld [vmem:[%s3384_s5 + $0x8] sm:$0xff]  }
  0x1c   : > { %v2665_v4 = vld [vmem:[%s2922_s22] sm:$0xff]   ;;  %466 = vst.msk [vmem:[#allocation2 + $0x20] sm:$0xff] %vm461_vm0, %v2787_v5  ;;  %467 = vst.msk [vmem:[#allocation2 + $0x28] sm:$0xff] %vm461_vm0, %v2787_v5  ;;  %2486 = vmatpush3.bf16.msra.mxu1 %v1143_v8  ;;  %v2668_v10 = vld [vmem:[%s2931_s10 + $0x8] sm:$0xff]   ;;  %s2116_s27 = scalar_lea.sflag [#allocation5], %s431_s16 }
  0x1d   : > { %468 = vst.msk [vmem:[#allocation2 + $0x30] sm:$0xff] %vm461_vm0, %v2787_v5  ;;  %469 = vst.msk [vmem:[#allocation2 + $0x38] sm:$0xff] %vm461_vm0, %v2787_v5  ;;  %2453 = vmatprep.mubr.bf16.mxu0 %v2665_v4  ;;  %v2667_v9 = vld [vmem:[%s2931_s10] sm:$0xff]   ;;  %v2671_v11 = vld [vmem:[%s2931_s10 + $0x10] sm:$0xff]   ;;  %2519 = vmatprep.subr.bf16.mxu1 %v2697_v25 }
  0x1e   : > { %2440 = vmatpush3.bf16.msra.mxu0 %v2658_v1  ;;  %470 = vst.msk [vmem:[#allocation2 + $0x40] sm:$0xff] %vm461_vm0, %v2787_v5  ;;  %471 = vst.msk [vmem:[#allocation2 + $0x48] sm:$0xff] %vm461_vm0, %v2787_v5  ;;  %2487 = vmatprep.mubr.msk.bf16.mxu1 %vm1092_vm2, %v2667_v9  ;;  %v2672_v14 = vld [vmem:[%s2931_s10 + $0x18] sm:$0xff]   ;;  %v2675_v15 = vld [vmem:[%s2931_s10 + $0x20] sm:$0xff]  }
  0x1f   : > { %2441 = vmatprep.subr.bf16.mxu0 %v2659_v2  ;;  %472 = vst.msk [vmem:[#allocation2 + $0x50] sm:$0xff] %vm461_vm0, %v2787_v5  ;;  %473 = vst.msk [vmem:[#allocation2 + $0x58] sm:$0xff] %vm461_vm0, %v2787_v5  ;;  %2488 = vmatmul.mubr.msk.bf16.vlgmr.msra.gmra.mxu1 %vm1092_vm2, %v2668_v10  ;;  %v2676_v17 = vld [vmem:[%s2931_s10 + $0x28] sm:$0xff]   ;;  %v2679_v18 = vld [vmem:[%s2931_s10 + $0x30] sm:$0xff]  }
  0x20   : > { %474 = vst.msk [vmem:[#allocation2 + $0x60] sm:$0xff] %vm461_vm0, %v2787_v5  ;;  %475 = vst.msk [vmem:[#allocation2 + $0x68] sm:$0xff] %vm461_vm0, %v2787_v5  ;;  %2491 = vmatprep.mubr.msk.bf16.mxu1 %vm1092_vm2, %v2671_v11  ;;  %v2666_v19 = vld [vmem:[%s2922_s22 + $0x8] sm:$0xff]   ;;  %v2669_v20 = vld [vmem:[%s2922_s22 + $0x10] sm:$0xff]   ;;  %2520 = vmatpush3.bf16.msra.mxu1 %v2697_v25 }
  0x21   : > { %476 = vst.msk [vmem:[#allocation2 + $0x70] sm:$0xff] %vm461_vm0, %v2787_v5  ;;  %477 = vst.msk [vmem:[#allocation2 + $0x78] sm:$0xff] %vm461_vm0, %v2787_v5  ;;  %v2680_v21 = vld [vmem:[%s2931_s10 + $0x38] sm:$0xff]   ;;  %v2683_v22 = vld [vmem:[%s2931_s10 + $0x40] sm:$0xff]  }
  0x22   : > { %478 = vst.msk [vmem:[#allocation2 + $0x80] sm:$0xff] %vm461_vm0, %v2787_v5  ;;  %479 = vst.msk [vmem:[#allocation2 + $0x88] sm:$0xff] %vm461_vm0, %v2787_v5  ;;  %2442 = vmatpush3.bf16.msra.mxu0 %v2659_v2  ;;  %v2670_v23 = vld [vmem:[%s2922_s22 + $0x18] sm:$0xff]   ;;  %v2673_v24 = vld [vmem:[%s2922_s22 + $0x20] sm:$0xff]  }
  0x23   : > { %480 = vst.msk [vmem:[#allocation2 + $0x90] sm:$0xff] %vm461_vm0, %v2787_v5  ;;  %481 = vst.msk [vmem:[#allocation2 + $0x98] sm:$0xff] %vm461_vm0, %v2787_v5  ;;  %2443 = vmatprep.subr.bf16.mxu0 %v2660_v3  ;;  %v2684_v26 = vld [vmem:[%s2931_s10 + $0x48] sm:$0xff]   ;;  %v2698_v27 = vld [vmem:[%s3384_s5] sm:$0xff]  }
  0x24   : > { %482 = vst.msk [vmem:[#allocation2 + $0xa0] sm:$0xff] %vm461_vm0, %v2787_v5  ;;  %483 = vst.msk [vmem:[#allocation2 + $0xa8] sm:$0xff] %vm461_vm0, %v2787_v5  ;;  %v2687_v28 = vld [vmem:[%s2931_s10 + $0x50] sm:$0xff]   ;;  %2521 = vmatprep.subr.bf16.mxu1 %v2698_v27  ;;  %v2674_v29 = vld [vmem:[%s2922_s22 + $0x28] sm:$0xff]  }
  0x25   : > { %484 = vst.msk [vmem:[#allocation2 + $0xb0] sm:$0xff] %vm461_vm0, %v2787_v5  ;;  %485 = vst.msk [vmem:[#allocation2 + $0xb8] sm:$0xff] %vm461_vm0, %v2787_v5  ;;  %v2677_v30 = vld [vmem:[%s2922_s22 + $0x30] sm:$0xff]   ;;  %2522 = vmatpush3.bf16.msra.mxu1 %v2698_v27  ;;  %v2688_v31 = vld [vmem:[%s2931_s10 + $0x58] sm:$0xff]  }
  0x26   : > { %486 = vst.msk [vmem:[#allocation2 + $0xc0] sm:$0xff] %vm461_vm0, %v2787_v5  ;;  %487 = vst.msk [vmem:[#allocation2 + $0xc8] sm:$0xff] %vm461_vm0, %v2787_v5  ;;  %2444 = vmatpush3.bf16.msra.mxu0 %v2660_v3  ;;  %v2691_v32 = vld [vmem:[%s2931_s10 + $0x60] sm:$0xff]   ;;  %v2678_v33 = vld [vmem:[%s2922_s22 + $0x38] sm:$0xff]  }
  0x27   : > { %488 = vst.msk [vmem:[#allocation2 + $0xd0] sm:$0xff] %vm461_vm0, %v2787_v5  ;;  %489 = vst.msk [vmem:[#allocation2 + $0xd8] sm:$0xff] %vm461_vm0, %v2787_v5  ;;  %2445 = vmatprep.subr.bf16.mxu0 %v2661_v6  ;;  %2492 = vmatmul.mubr.msk.bf16.gmra.mxu1 %vm1092_vm2, %v2672_v14  ;;  %v2681_v34 = vld [vmem:[%s2922_s22 + $0x40] sm:$0xff]   ;;  %v2692_v35 = vld [vmem:[%s2931_s10 + $0x68] sm:$0xff]  }
  0x28   : > { %490 = vst.msk [vmem:[#allocation2 + $0xe0] sm:$0xff] %vm461_vm0, %v2787_v5  ;;  %491 = vst.msk [vmem:[#allocation2 + $0xe8] sm:$0xff] %vm461_vm0, %v2787_v5  ;;  %2495 = vmatprep.mubr.msk.bf16.mxu1 %vm1092_vm2, %v2675_v15  ;;  %v2695_v36 = vld [vmem:[%s2931_s10 + $0x70] sm:$0xff]   ;;  %v2682_v37 = vld [vmem:[%s2922_s22 + $0x48] sm:$0xff]  }
  0x29   : > { %492 = vst.msk [vmem:[#allocation2 + $0xf0] sm:$0xff] %vm461_vm0, %v2787_v5  ;;  %493 = vst.msk [vmem:[#allocation2 + $0xf8] sm:$0xff] %vm461_vm0, %v2787_v5  ;;  %v2685_v38 = vld [vmem:[%s2922_s22 + $0x50] sm:$0xff]   ;;  %v2696_v39 = vld [vmem:[%s2931_s10 + $0x78] sm:$0xff]  }
  0x2a   : > { %2446 = vmatpush3.bf16.msra.mxu0 %v2661_v6  ;;  %v2686_v40 = vld [vmem:[%s2922_s22 + $0x58] sm:$0xff]   ;;  %v2689_v41 = vld [vmem:[%s2922_s22 + $0x60] sm:$0xff]   ;;  %v2690_v42 = vld [vmem:[%s2922_s22 + $0x68] sm:$0xff]  }
  0x2b   : > { %2447 = vmatprep.subr.bf16.mxu0 %v2662_v12  ;;  %v2693_v43 = vld [vmem:[%s2922_s22 + $0x70] sm:$0xff]   ;;  %v2694_v44 = vld [vmem:[%s2922_s22 + $0x78] sm:$0xff]   ;;  %v2699_v45 = vld [vmem:[%s3386_s7 + $0x8] sm:$0xff]   ;;  %s433_s22 = scalar_lea.vmem [#allocation4], %s2233_s17 }
  0x2c   : > { %v2700_v46 = vld [vmem:[%s3386_s7] sm:$0xff]   ;;  %v496_v56 = vld [vmem:[#allocation2 + $0x10] sm:$0xff]  ;;  %v497_v63 = vld [vmem:[#allocation2 + $0x18] sm:$0xff]  ;;  %s2130_s10 = sshll.u32 %s433_s22, 4  ;;  %s2131_s10 = int_to_ptr.vmem [resolvable:$true] %s2130_s10 }
  0x2d   : > { %v494_v59 = vld [vmem:[#allocation2] sm:$0xff]  ;;  %v495_v3 = vld [vmem:[#allocation2 + $0x8] sm:$0xff]  ;;  %v500_v7 = vld [vmem:[#allocation2 + $0x30] sm:$0xff]  ;;  %s2709_s29 = scalar_lea.vmem %s2131_s10, 32 }
  0x2e   : > { %2448 = vmatpush3.bf16.msra.mxu0 %v2662_v12  ;;  %v498_v11 = vld [vmem:[#allocation2 + $0x20] sm:$0xff]  ;;  %v501_v15 = vld [vmem:[#allocation2 + $0x38] sm:$0xff]  ;;  %p2710_p12 = scmp.ne.s32.totalorder %s2131_s10, %s2709_s29 }
  0x2f   : > { %2449 = vmatprep.subr.bf16.mxu0 %v2663_v13  ;;  %2496 = vmatmul.mubr.msk.bf16.gmra.mxu1 %vm1092_vm2, %v2676_v17 }
  0x30   : > { %2499 = vmatprep.mubr.msk.bf16.mxu1 %vm1092_vm2, %v2679_v18  ;;  %p2711_p13 = pnand %p2710_p12, %p2891_p4 }
  0x32   : > { %2450 = vmatpush3.bf16.msra.mxu0 %v2663_v13  ;;  %p2712_p0 = pneg %p2711_p13 }
  0x33   : > { %2451 = vmatprep.subr.bf16.mxu0 %v2664_v16 }
  0x36   : > { %2452 = vmatpush3.bf16.msra.mxu0 %v2664_v16 }
  0x37   : > { %2500 = vmatmul.mubr.msk.bf16.gmra.mxu1 %vm1092_vm2, %v2680_v21  ;;  %2555 = vmatprep.subr.bf16.mxu0 %v2699_v45  ;;  %v499_v21 = vld [vmem:[#allocation2 + $0x28] sm:$0xff] }
  0x38   : > { %2503 = vmatprep.mubr.msk.bf16.mxu1 %vm1092_vm2, %v2683_v22 }
  0x39   : > { %2454 = vmatmul.mubr.bf16.vlgmr.msra.gmra.mxu0 %v2666_v19 }
  0x3a   : > { %2457 = vmatprep.mubr.bf16.mxu0 %v2669_v20  ;;  %2556 = vmatpush3.bf16.msra.mxu0 %v2699_v45  ;;  %v505_v45 = vld [vmem:[#allocation2 + $0x58] sm:$0xff] }
  0x3b   : > { %2557 = vmatprep.subr.bf16.mxu0 %v2700_v46 }
  0x3e   : > { %2558 = vmatpush3.bf16.msra.mxu0 %v2700_v46 }
  0x3f   : > { %2504 = vmatmul.mubr.msk.bf16.gmra.mxu1 %vm1092_vm2, %v2684_v26 }
  0x40   : > { %2507 = vmatprep.mubr.msk.bf16.mxu1 %vm1092_vm2, %v2687_v28  ;;  %v504_v28 = vld [vmem:[#allocation2 + $0x50] sm:$0xff] }
  0x41   : > { %2458 = vmatmul.mubr.bf16.gmra.mxu0 %v2670_v23 }
  0x42   : > { %2461 = vmatprep.mubr.bf16.mxu0 %v2673_v24 }
  0x47   : > { %2508 = vmatmul.mubr.msk.bf16.gmra.mxu1 %vm1092_vm2, %v2688_v31 }
  0x48   : > { %2511 = vmatprep.mubr.msk.bf16.mxu1 %vm1092_vm2, %v2691_v32 }
  0x49   : > { %2462 = vmatmul.mubr.bf16.gmra.mxu0 %v2674_v29  ;;  %v3076_v29 = vld [vmem:[%s3383_s4] ss:$0 sm:$0xff] }
  0x4a   : > { %2465 = vmatprep.mubr.bf16.mxu0 %v2677_v30 }
  0x4f   : > { %2512 = vmatmul.mubr.msk.bf16.gmra.mxu1 %vm1092_vm2, %v2692_v35 }
  0x50   : > { %2515 = vmatprep.mubr.msk.bf16.mxu1 %vm1092_vm2, %v2695_v36 }
  0x51   : > { %2466 = vmatmul.mubr.bf16.gmra.mxu0 %v2678_v33 }
  0x52   : > { %2469 = vmatprep.mubr.bf16.mxu0 %v2681_v34  ;;  %v502_v34 = vld [vmem:[#allocation2 + $0x40] sm:$0xff] }
  0x57   : > { %2516 = vmatmul.mubr.msk.bf16.gmra.mxu1 %vm1092_vm2, %v2696_v39 }
  0x59   : > { %2470 = vmatmul.mubr.bf16.gmra.mxu0 %v2682_v37 }
  0x5a   : > { %2473 = vmatprep.mubr.bf16.mxu0 %v2685_v38 }
  0x61   : > { %2474 = vmatmul.mubr.bf16.gmra.mxu0 %v2686_v40 }
  0x62   : > { %2477 = vmatprep.mubr.bf16.mxu0 %v2689_v41 }
  0x69   : > { %2478 = vmatmul.mubr.bf16.gmra.mxu0 %v2690_v42 }
  0x6a   : > { %2481 = vmatprep.mubr.bf16.mxu0 %v2693_v43 }
  0x71   : > { %2482 = vmatmul.mubr.bf16.gmra.mxu0 %v2694_v44 }
  0xdf   : > { %v2489_v47 = vpop.f32.mrf.mxu1 }
  0xe1   : > { %v1179_v48 = vpop.f32.mrf.mxu1 }
  0xe3   : > { %v2490_v49 = vpop.f32.mrf.mxu1 }
  0xe5   : > { %v1182_v50 = vpop.f32.mrf.mxu1 }
  0xe7   : > { %v3041_v51 = vpop.f32.mrf.mxu1 }
  0xe9   : > { %v3043_v52 = vpop.f32.mrf.mxu1 }
  0xeb   : > { %v3045_v53 = vpop.f32.mrf.mxu1 }
  0xed   : > { %v3047_v54 = vpop.f32.mrf.mxu1 }
  0xef   : > { %v3049_v55 = vpop.f32.mrf.mxu1 }
  0xf1   : > { %v3051_v57 = vpop.f32.mrf.mxu1 }
  0xf3   : > { %v3053_v61 = vpop.f32.mrf.mxu1 }
  0xf5   : > { %v3056_v1 = vpop.f32.mrf.mxu1 }
  0xf7   : > { %v3059_v5 = vpop.f32.mrf.mxu1 }
  0xf9   : > { %v2455_v58 = vpop.f32.mrf.mxu0  ;;  %v3062_v9 = vpop.f32.mrf.mxu1 }
  0xfa   : > { %v881_v60 = vadd.f32 %v2455_v58, %v496_v56 }
  0xfb   : > { %v752_v62 = vpop.f32.mrf.mxu0  ;;  %v3065_v13 = vpop.f32.mrf.mxu1 }
  0xfc   : > { %914 = vst.msk [vmem:[#allocation2 + $0x10] sm:$0xff] %vm461_vm0, %v881_v60  ;;  %v879_v0 = vadd.f32 %v752_v62, %v494_v59  ;;  %v503_v59 = vld [vmem:[#allocation2 + $0x48] sm:$0xff] }
  0xfd   : > { %v2456_v2 = vpop.f32.mrf.mxu0  ;;  %v3068_v18 = vpop.f32.mrf.mxu1 }
  0xfe   : > { %912 = vst.msk [vmem:[#allocation2] sm:$0xff] %vm461_vm0, %v879_v0  ;;  %v882_v4 = vadd.f32 %v2456_v2, %v497_v63 }
  0xff   : > { %v755_v6 = vpop.f32.mrf.mxu0  ;;  %v3071_v24 = vpop.f32.mrf.mxu1 }
 0x100   : > { %915 = vst.msk [vmem:[#allocation2 + $0x18] sm:$0xff] %vm461_vm0, %v882_v4  ;;  %v880_v8 = vadd.f32 %v755_v6, %v495_v3  ;;  %v508_v3 = vld [vmem:[#allocation2 + $0x70] sm:$0xff] }
 0x101   : > { %v2459_v10 = vpop.f32.mrf.mxu0  ;;  %v3079_v35 = vpop.f32.mrf.mxu1 }
 0x102   : > { %913 = vst.msk [vmem:[#allocation2 + $0x8] sm:$0xff] %vm461_vm0, %v880_v8  ;;  %v885_v12 = vadd.f32 %v2459_v10, %v500_v7 }
 0x103   : > { %v768_v14 = vpop.f32.mrf.mxu0  ;;  %v949_v16 = vld [vmem:[#allocation2 + $0x10] sm:$0xff] }
 0x104   : > { %918 = vst.msk [vmem:[#allocation2 + $0x30] sm:$0xff] %vm461_vm0, %v885_v12  ;;  %v883_v17 = vadd.f32 %v768_v14, %v498_v11  ;;  %v1308_v25 = vadd.f32 %v2489_v47, %v949_v16 }
 0x105   : > { %v947_v19 = vld [vmem:[#allocation2] sm:$0xff]  ;;  %v2460_v20 = vpop.f32.mrf.mxu0 }
 0x106   : > { %v1306_v22 = vadd.f32 %v1179_v48, %v947_v19  ;;  %916 = vst.msk [vmem:[#allocation2 + $0x20] sm:$0xff] %vm461_vm0, %v883_v17  ;;  %v886_v23 = vadd.f32 %v2460_v20, %v501_v15  ;;  %v1347_v40 = vadd.f32 %v3076_v29, %v1308_v25 }
 0x107   : > { %v950_v26 = vld [vmem:[#allocation2 + $0x18] sm:$0xff]  ;;  %v771_v27 = vpop.f32.mrf.mxu0 }
 0x108   : > { %v1309_v30 = vadd.f32 %v2490_v49, %v950_v26  ;;  %919 = vst.msk [vmem:[#allocation2 + $0x38] sm:$0xff] %vm461_vm0, %v886_v23  ;;  %v884_v31 = vadd.f32 %v771_v27, %v499_v21  ;;  %v1345_v36 = vadd.f32 %v3076_v29, %v1306_v22  ;;  %v3087_v49 = vpop.f32.mrf.mxu1  ;;  %v1379_v60 = vmax.f32 %v1347_v40, 0.0  ;;  %v509_v21 = vld [vmem:[#allocation2 + $0x78] sm:$0xff]  ;;  %v507_v26 = vld [vmem:[#allocation2 + $0x68] sm:$0xff] }
 0x109   : > { %v948_v32 = vld [vmem:[#allocation2 + $0x8] sm:$0xff]  ;;  %v2463_v33 = vpop.f32.mrf.mxu0 }
 0x10a   : > { %v1348_v37 = vadd.f32 %v3076_v29, %v1309_v30  ;;  %v1307_v38 = vadd.f32 %v1182_v50, %v948_v32  ;;  %917 = vst.msk [vmem:[#allocation2 + $0x28] sm:$0xff] %vm461_vm0, %v884_v31  ;;  %v889_v39 = vadd.f32 %v2463_v33, %v504_v28  ;;  %v1377_v56 = vmax.f32 %v1345_v36, 0.0  ;;  %v3094_v12 = vpop.f32.mrf.mxu1  ;;  %v512_v36 = vld [vmem:[#allocation2 + $0x90] sm:$0xff] }
 0x10b   : > { %v784_v41 = vpop.f32.mrf.mxu0  ;;  %v953_v43 = vld [vmem:[#allocation2 + $0x30] sm:$0xff] }
 0x10c   : > { %v1346_v42 = vadd.f32 %v3076_v29, %v1307_v38  ;;  %922 = vst.msk [vmem:[#allocation2 + $0x50] sm:$0xff] %vm461_vm0, %v889_v39  ;;  %v887_v44 = vadd.f32 %v784_v41, %v502_v34  ;;  %v1380_v46 = vmax.f32 %v1348_v37, 0.0  ;;  %v1312_v62 = vadd.f32 %v3041_v51, %v953_v43  ;;  %v3105_v27 = vpop.f32.mrf.mxu1 }
 0x10d   : > { %v951_v47 = vld [vmem:[#allocation2 + $0x20] sm:$0xff]  ;;  %v2464_v48 = vpop.f32.mrf.mxu0 }
 0x10e   : > { %v1378_v50 = vmax.f32 %v1346_v42, 0.0  ;;  %v1310_v58 = vadd.f32 %v3043_v52, %v951_v47  ;;  %920 = vst.msk [vmem:[#allocation2 + $0x40] sm:$0xff] %vm461_vm0, %v887_v44  ;;  %v890_v0 = vadd.f32 %v2464_v48, %v505_v45  ;;  %v1410_v7 = vpack.c.bf16 %v1380_v46, %v1379_v60  ;;  %v506_v52 = vld [vmem:[#allocation2 + $0x60] sm:$0xff]  ;;  %v3112_v45 = vpop.f32.mrf.mxu1 }
 0x10f   : > { %v954_v63 = vld [vmem:[#allocation2 + $0x38] sm:$0xff]  ;;  %v787_v2 = vpop.f32.mrf.mxu0  ;;  %v510_v44 = vld [vmem:[#allocation2 + $0x80] sm:$0xff] }
 0x110   : > { %v1409_v4 = vpack.c.bf16 %v1378_v50, %v1377_v56  ;;  %v1313_v6 = vadd.f32 %v3045_v53, %v954_v63  ;;  %923 = vst.msk [vmem:[#allocation2 + $0x58] sm:$0xff] %vm461_vm0, %v890_v0  ;;  %v888_v10 = vadd.f32 %v787_v2, %v503_v59  ;;  %v1349_v14 = vadd.f32 %v3076_v29, %v1310_v58  ;;  %v511_v0 = vld [vmem:[#allocation2 + $0x88] sm:$0xff]  ;;  %v3123_v2 = vpop.f32.mrf.mxu1 }
 0x111   : > { %v952_v8 = vld [vmem:[#allocation2 + $0x28] sm:$0xff]  ;;  %v2467_v11 = vpop.f32.mrf.mxu0  ;;  %v1351_v53 = vadd.f32 %v3076_v29, %v1312_v62 }
 0x112   : > { %v1352_v51 = vadd.f32 %v3076_v29, %v1313_v6  ;;  %v1311_v15 = vadd.f32 %v3047_v54, %v952_v8  ;;  %v893_v16 = vadd.f32 %v2467_v11, %v508_v3  ;;  %2523 = vmatprep.mubr.msk.bf16.mxu1 %vm461_vm0, %v1409_v4  ;;  %921 = vst.msk [vmem:[#allocation2 + $0x48] sm:$0xff] %vm461_vm0, %v888_v10  ;;  %v1381_v28 = vmax.f32 %v1349_v14, 0.0  ;;  %v516_v11 = vld [vmem:[#allocation2 + $0xb0] sm:$0xff] }
 0x113   : > { %v800_v17 = vpop.f32.mrf.mxu0  ;;  %2524 = vmatmul.mubr.msk.bf16.vlgmr.msra.gmra.mxu1 %vm461_vm0, %v1410_v7  ;;  %v957_v23 = vld [vmem:[#allocation2 + $0x50] sm:$0xff]  ;;  %v1383_v31 = vmax.f32 %v1351_v53, 0.0 }
 0x114   : > { %v1350_v19 = vadd.f32 %v3076_v29, %v1311_v15  ;;  %926 = vst.msk [vmem:[#allocation2 + $0x70] sm:$0xff] %vm461_vm0, %v893_v16  ;;  %v891_v20 = vadd.f32 %v800_v17, %v506_v52  ;;  %v1384_v22 = vmax.f32 %v1352_v51, 0.0  ;;  %v1316_v38 = vadd.f32 %v3049_v55, %v957_v23 }
 0x115   : > { %v955_v25 = vld [vmem:[#allocation2 + $0x40] sm:$0xff]  ;;  %v2468_v54 = vpop.f32.mrf.mxu0 }
 0x116   : > { %v1382_v30 = vmax.f32 %v1350_v19, 0.0  ;;  %924 = vst.msk [vmem:[#allocation2 + $0x60] sm:$0xff] %vm461_vm0, %v891_v20  ;;  %v1314_v32 = vadd.f32 %v3051_v57, %v955_v25  ;;  %v894_v33 = vadd.f32 %v2468_v54, %v509_v21  ;;  %v1412_v41 = vpack.c.bf16 %v1384_v22, %v1383_v31  ;;  %v3130_v19 = vpop.f32.mrf.mxu1  ;;  %v517_v54 = vld [vmem:[#allocation2 + $0xb8] sm:$0xff] }
 0x117   : > { %v803_v34 = vpop.f32.mrf.mxu0  ;;  %v958_v39 = vld [vmem:[#allocation2 + $0x58] sm:$0xff]  ;;  %v1355_v50 = vadd.f32 %v3076_v29, %v1316_v38 }
 0x118   : > { %v1411_v37 = vpack.c.bf16 %v1382_v30, %v1381_v28  ;;  %v892_v40 = vadd.f32 %v803_v34, %v507_v26  ;;  %v1317_v42 = vadd.f32 %v3053_v61, %v958_v39  ;;  %927 = vst.msk [vmem:[#allocation2 + $0x78] sm:$0xff] %vm461_vm0, %v894_v33  ;;  %v1353_v47 = vadd.f32 %v3076_v29, %v1314_v32  ;;  %v513_v61 = vld [vmem:[#allocation2 + $0x98] sm:$0xff]  ;;  %v3141_v33 = vpop.f32.mrf.mxu1  ;;  %v515_v39 = vld [vmem:[#allocation2 + $0xa8] sm:$0xff] }
 0x119   : > { %v2471_v43 = vpop.f32.mrf.mxu0  ;;  %v956_v46 = vld [vmem:[#allocation2 + $0x48] sm:$0xff]  ;;  %v1387_v52 = vmax.f32 %v1355_v50, 0.0 }
 0x11a   : > { %925 = vst.msk [vmem:[#allocation2 + $0x68] sm:$0xff] %vm461_vm0, %v892_v40  ;;  %v897_v57 = vadd.f32 %v2471_v43, %v512_v36  ;;  %2527 = vmatprep.mubr.msk.bf16.mxu1 %vm461_vm0, %v1411_v37  ;;  %v1356_v55 = vadd.f32 %v3076_v29, %v1317_v42  ;;  %v1315_v48 = vadd.f32 %v3056_v1, %v956_v46  ;;  %v1385_v6 = vmax.f32 %v1353_v47, 0.0  ;;  %v520_v43 = vld [vmem:[#allocation2 + $0xd0] sm:$0xff] }
 0x11b   : > { %v816_v56 = vpop.f32.mrf.mxu0  ;;  %2528 = vmatmul.mubr.msk.bf16.gmra.mxu1 %vm461_vm0, %v1412_v41  ;;  %v961_v58 = vld [vmem:[#allocation2 + $0x70] sm:$0xff] }
 0x11c   : > { %930 = vst.msk [vmem:[#allocation2 + $0x90] sm:$0xff] %vm461_vm0, %v897_v57  ;;  %v895_v59 = vadd.f32 %v816_v56, %v510_v44  ;;  %v1354_v60 = vadd.f32 %v3076_v29, %v1315_v48  ;;  %v1388_v3 = vmax.f32 %v1356_v55, 0.0  ;;  %v1320_v8 = vadd.f32 %v3059_v5, %v961_v58 }
 0x11d   : > { %v959_v62 = vld [vmem:[#allocation2 + $0x60] sm:$0xff]  ;;  %v2472_v63 = vpop.f32.mrf.mxu0 }
 0x11e   : > { %v1318_v1 = vadd.f32 %v3062_v9, %v959_v62  ;;  %928 = vst.msk [vmem:[#allocation2 + $0x80] sm:$0xff] %vm461_vm0, %v895_v59  ;;  %v898_v4 = vadd.f32 %v2472_v63, %v513_v61  ;;  %v1386_v7 = vmax.f32 %v1354_v60, 0.0  ;;  %v514_v9 = vld [vmem:[#allocation2 + $0xa0] sm:$0xff]  ;;  %v1414_v20 = vpack.c.bf16 %v1388_v3, %v1387_v52  ;;  %v1275_v61 = vpop.f32.mrf.mxu1 }
 0x11f   : > { %v819_v10 = vpop.f32.mrf.mxu0  ;;  %v962_v14 = vld [vmem:[#allocation2 + $0x78] sm:$0xff]  ;;  %v1359_v23 = vadd.f32 %v3076_v29, %v1320_v8 }
 0x120   : > { %931 = vst.msk [vmem:[#allocation2 + $0x98] sm:$0xff] %vm461_vm0, %v898_v4  ;;  %v896_v51 = vadd.f32 %v819_v10, %v511_v0  ;;  %v1413_v15 = vpack.c.bf16 %v1386_v7, %v1385_v6  ;;  %v1321_v16 = vadd.f32 %v3065_v13, %v962_v14  ;;  %v1357_v21 = vadd.f32 %v3076_v29, %v1318_v1  ;;  %v521_v0 = vld [vmem:[#allocation2 + $0xd8] sm:$0xff]  ;;  %v519_v10 = vld [vmem:[#allocation2 + $0xc8] sm:$0xff] }
 0x121   : > { %v960_v53 = vld [vmem:[#allocation2 + $0x68] sm:$0xff]  ;;  %v2475_v17 = vpop.f32.mrf.mxu0  ;;  %v1391_v40 = vmax.f32 %v1359_v23, 0.0 }
 0x122   : > { %v1319_v5 = vadd.f32 %v3068_v18, %v960_v53  ;;  %929 = vst.msk [vmem:[#allocation2 + $0x88] sm:$0xff] %vm461_vm0, %v896_v51  ;;  %v901_v22 = vadd.f32 %v2475_v17, %v516_v11  ;;  %v1360_v25 = vadd.f32 %v3076_v29, %v1321_v16  ;;  %2531 = vmatprep.mubr.msk.bf16.mxu1 %vm461_vm0, %v1413_v15  ;;  %v1389_v34 = vmax.f32 %v1357_v21, 0.0  ;;  %v524_v15 = vld [vmem:[#allocation2 + $0xf0] sm:$0xff] }
 0x123   : > { %v832_v13 = vpop.f32.mrf.mxu0  ;;  %2532 = vmatmul.mubr.msk.bf16.gmra.mxu1 %vm461_vm0, %v1414_v20  ;;  %v965_v18 = vld [vmem:[#allocation2 + $0x90] sm:$0xff] }
 0x124   : > { %v1358_v26 = vadd.f32 %v3076_v29, %v1319_v5  ;;  %934 = vst.msk [vmem:[#allocation2 + $0xb0] sm:$0xff] %vm461_vm0, %v901_v22  ;;  %v899_v28 = vadd.f32 %v832_v13, %v514_v9  ;;  %v1392_v30 = vmax.f32 %v1360_v25, 0.0  ;;  %v1324_v46 = vadd.f32 %v3071_v24, %v965_v18  ;;  %v522_v5 = vld [vmem:[#allocation2 + $0xe0] sm:$0xff] }
 0x125   : > { %v963_v31 = vld [vmem:[#allocation2 + $0x80] sm:$0xff]  ;;  %v2476_v32 = vpop.f32.mrf.mxu0 }
 0x126   : > { %v1390_v36 = vmax.f32 %v1358_v26, 0.0  ;;  %v1322_v37 = vadd.f32 %v3079_v35, %v963_v31  ;;  %932 = vst.msk [vmem:[#allocation2 + $0xa0] sm:$0xff] %vm461_vm0, %v899_v28  ;;  %v902_v38 = vadd.f32 %v2476_v32, %v517_v54  ;;  %v1416_v47 = vpack.c.bf16 %v1392_v30, %v1391_v40  ;;  %v518_v35 = vld [vmem:[#allocation2 + $0xc0] sm:$0xff] }
 0x127   : > { %v966_v41 = vld [vmem:[#allocation2 + $0x98] sm:$0xff]  ;;  %v835_v42 = vpop.f32.mrf.mxu0 }
 0x128   : > { %v1415_v44 = vpack.c.bf16 %v1390_v36, %v1389_v34  ;;  %v1325_v57 = vadd.f32 %v3087_v49, %v966_v41  ;;  %935 = vst.msk [vmem:[#allocation2 + $0xb8] sm:$0xff] %vm461_vm0, %v902_v38  ;;  %v900_v48 = vadd.f32 %v835_v42, %v515_v39  ;;  %v1361_v50 = vadd.f32 %v3076_v29, %v1322_v37  ;;  %v523_v37 = vld [vmem:[#allocation2 + $0xe8] sm:$0xff] }
 0x129   : > { %v964_v55 = vld [vmem:[#allocation2 + $0x88] sm:$0xff]  ;;  %v2479_v56 = vpop.f32.mrf.mxu0  ;;  %v1363_v49 = vadd.f32 %v3076_v29, %v1324_v46 }
 0x12a   : > { %v1364_v58 = vadd.f32 %v3076_v29, %v1325_v57  ;;  %v1323_v59 = vadd.f32 %v3094_v12, %v964_v55  ;;  %v905_v60 = vadd.f32 %v2479_v56, %v520_v43  ;;  %2535 = vmatprep.mubr.msk.bf16.mxu1 %vm461_vm0, %v1415_v44  ;;  %933 = vst.msk [vmem:[#allocation2 + $0xa8] sm:$0xff] %vm461_vm0, %v900_v48  ;;  %v2514_v12 = vpop.f32.mrf.mxu1  ;;  %v1393_v6 = vmax.f32 %v1361_v50, 0.0 }
 0x12b   : > { %v848_v24 = vpop.f32.mrf.mxu0  ;;  %2536 = vmatmul.mubr.msk.bf16.gmra.mxu1 %vm461_vm0, %v1416_v47  ;;  %v969_v3 = vld [vmem:[#allocation2 + $0xb0] sm:$0xff]  ;;  %v1395_v16 = vmax.f32 %v1363_v49, 0.0 }
 0x12c   : > { %v1362_v62 = vadd.f32 %v3076_v29, %v1323_v59  ;;  %938 = vst.msk [vmem:[#allocation2 + $0xd0] sm:$0xff] %vm461_vm0, %v905_v60  ;;  %v903_v63 = vadd.f32 %v848_v24, %v518_v35  ;;  %v1396_v7 = vmax.f32 %v1364_v58, 0.0  ;;  %v1328_v17 = vadd.f32 %v3105_v27, %v969_v3  ;;  %v1278_v22 = vpop.f32.mrf.mxu1 }
 0x12d   : > { %v967_v1 = vld [vmem:[#allocation2 + $0xa0] sm:$0xff]  ;;  %v2480_v4 = vpop.f32.mrf.mxu0 }
 0x12e   : > { %v1394_v8 = vmax.f32 %v1362_v62, 0.0  ;;  %936 = vst.msk [vmem:[#allocation2 + $0xc0] sm:$0xff] %vm461_vm0, %v903_v63  ;;  %v1326_v11 = vadd.f32 %v3112_v45, %v967_v1  ;;  %v906_v14 = vadd.f32 %v2480_v4, %v521_v0  ;;  %v1418_v23 = vpack.c.bf16 %v1396_v7, %v1395_v16  ;;  %v2517_v36 = vpop.f32.mrf.mxu1 }
 0x12f   : > { %v970_v52 = vld [vmem:[#allocation2 + $0xb8] sm:$0xff]  ;;  %v851_v51 = vpop.f32.mrf.mxu0  ;;  %v1367_v28 = vadd.f32 %v3076_v29, %v1328_v17 }
 0x130   : > { %v1417_v53 = vpack.c.bf16 %v1394_v8, %v1393_v6  ;;  %v1329_v9 = vadd.f32 %v3123_v2, %v970_v52  ;;  %939 = vst.msk [vmem:[#allocation2 + $0xd8] sm:$0xff] %vm461_vm0, %v906_v14  ;;  %v904_v20 = vadd.f32 %v851_v51, %v519_v10  ;;  %v1365_v54 = vadd.f32 %v3076_v29, %v1326_v11  ;;  %v525_v2 = vld [vmem:[#allocation2 + $0xf8] sm:$0xff]  ;;  %v1291_v48 = vpop.f32.mrf.mxu1 }
 0x131   : > { %v2483_v21 = vpop.f32.mrf.mxu0  ;;  %v968_v45 = vld [vmem:[#allocation2 + $0xa8] sm:$0xff]  ;;  %v1399_v43 = vmax.f32 %v1367_v28, 0.0 }
 0x132   : > { %v1368_v25 = vadd.f32 %v3076_v29, %v1329_v9  ;;  %v909_v13 = vadd.f32 %v2483_v21, %v524_v15  ;;  %2539 = vmatprep.mubr.msk.bf16.mxu1 %vm461_vm0, %v1417_v53  ;;  %v1327_v26 = vadd.f32 %v3130_v19, %v968_v45  ;;  %937 = vst.msk [vmem:[#allocation2 + $0xc8] sm:$0xff] %vm461_vm0, %v904_v20  ;;  %v1397_v39 = vmax.f32 %v1365_v54, 0.0  ;;  %v2518_v49 = vpop.f32.mrf.mxu1 }
 0x133   : > { %v864_v27 = vpop.f32.mrf.mxu0  ;;  %2540 = vmatmul.mubr.msk.bf16.gmra.mxu1 %vm461_vm0, %v1418_v23  ;;  %v973_v31 = vld [vmem:[#allocation2 + $0xd0] sm:$0xff] }
 0x134   : > { %942 = vst.msk [vmem:[#allocation2 + $0xf0] sm:$0xff] %vm461_vm0, %v909_v13  ;;  %v907_v30 = vadd.f32 %v864_v27, %v522_v5  ;;  %v1366_v18 = vadd.f32 %v3076_v29, %v1327_v26  ;;  %v1400_v38 = vmax.f32 %v1368_v25, 0.0  ;;  %v1332_v44 = vadd.f32 %v3141_v33, %v973_v31  ;;  %v1294_v10 = vpop.f32.mrf.mxu1  ;;  %v3192_v25 = vld [vmem:[%s3385_s6] ss:$0 sm:$0xff] }
 0x135   : > { %v971_v32 = vld [vmem:[#allocation2 + $0xc0] sm:$0xff]  ;;  %v2484_v34 = vpop.f32.mrf.mxu0 }
 0x136   : > { %940 = vst.msk [vmem:[#allocation2 + $0xe0] sm:$0xff] %vm461_vm0, %v907_v30  ;;  %v910_v19 = vadd.f32 %v2484_v34, %v525_v2  ;;  %v1398_v40 = vmax.f32 %v1366_v18, 0.0  ;;  %v1330_v41 = vadd.f32 %v1275_v61, %v971_v32  ;;  %v1420_v56 = vpack.c.bf16 %v1400_v38, %v1399_v43 }
 0x137   : > { %v867_v42 = vpop.f32.mrf.mxu0  ;;  %v974_v46 = vld [vmem:[#allocation2 + $0xd8] sm:$0xff]  ;;  %v1371_v33 = vadd.f32 %v3076_v29, %v1332_v44 }
 0x138   : > { %943 = vst.msk [vmem:[#allocation2 + $0xf8] sm:$0xff] %vm461_vm0, %v910_v19  ;;  %v908_v57 = vadd.f32 %v867_v42, %v523_v37  ;;  %v1419_v47 = vpack.c.bf16 %v1398_v40, %v1397_v39  ;;  %v1333_v55 = vadd.f32 %v2514_v12, %v974_v46  ;;  %v1369_v50 = vadd.f32 %v3076_v29, %v1330_v41 }
 0x139   : > { %v972_v35 = vld [vmem:[#allocation2 + $0xc8] sm:$0xff]  ;;  %v1403_v4 = vmax.f32 %v1371_v33, 0.0 }
 0x13a   : > { %941 = vst.msk [vmem:[#allocation2 + $0xe8] sm:$0xff] %vm461_vm0, %v908_v57  ;;  %v1372_v58 = vadd.f32 %v3076_v29, %v1333_v55  ;;  %v1331_v61 = vadd.f32 %v1278_v22, %v972_v35  ;;  %2543 = vmatprep.mubr.msk.bf16.mxu1 %vm461_vm0, %v1419_v47  ;;  %v1401_v0 = vmax.f32 %v1369_v50, 0.0 }
 0x13b   : > { %2544 = vmatmul.mubr.msk.bf16.gmra.mxu1 %vm461_vm0, %v1420_v56  ;;  %v977_v60 = vld [vmem:[#allocation2 + $0xf0] sm:$0xff] }
 0x13c   : > { %v1370_v59 = vadd.f32 %v3076_v29, %v1331_v61  ;;  %v1404_v62 = vmax.f32 %v1372_v58, 0.0  ;;  %v1336_v12 = vadd.f32 %v2517_v36, %v977_v60 }
 0x13d   : > { %v975_v24 = vld [vmem:[#allocation2 + $0xe0] sm:$0xff] }
 0x13e   : > { %v1334_v63 = vadd.f32 %v1291_v48, %v975_v24  ;;  %v1402_v3 = vmax.f32 %v1370_v59, 0.0  ;;  %v1422_v11 = vpack.c.bf16 %v1404_v62, %v1403_v4  ;;  %v1375_v15 = vadd.f32 %v3076_v29, %v1336_v12 }
 0x13f   : > { %v978_v1 = vld [vmem:[#allocation2 + $0xf8] sm:$0xff] }
 0x140   : > { %v1337_v6 = vadd.f32 %v2518_v49, %v978_v1  ;;  %v1421_v7 = vpack.c.bf16 %v1402_v3, %v1401_v0  ;;  %v1373_v52 = vadd.f32 %v3076_v29, %v1334_v63  ;;  %v1407_v20 = vmax.f32 %v1375_v15, 0.0 }
 0x141   : > { %v976_v8 = vld [vmem:[#allocation2 + $0xe8] sm:$0xff] }
 0x142   : > { %v1376_v14 = vadd.f32 %v3076_v29, %v1337_v6  ;;  %v1335_v51 = vadd.f32 %v1294_v10, %v976_v8  ;;  %2547 = vmatprep.mubr.msk.bf16.mxu1 %vm461_vm0, %v1421_v7  ;;  %v1405_v53 = vmax.f32 %v1373_v52, 0.0 }
 0x143   : > { %2548 = vmatmul.mubr.msk.bf16.gmra.mxu1 %vm461_vm0, %v1422_v11 }
 0x144   : > { %v1374_v16 = vadd.f32 %v3076_v29, %v1335_v51  ;;  %v1408_v17 = vmax.f32 %v1376_v14, 0.0 }
 0x146   : > { %v1406_v9 = vmax.f32 %v1374_v16, 0.0  ;;  %v1424_v5 = vpack.c.bf16 %v1408_v17, %v1407_v20 }
 0x148   : > { %v1423_v21 = vpack.c.bf16 %v1406_v9, %v1405_v53 }
 0x14a   : > { %2551 = vmatprep.mubr.msk.bf16.mxu1 %vm461_vm0, %v1423_v21 }
 0x14b   : > { %2552 = vmatmul.mubr.msk.bf16.gmra.mxu1 %vm461_vm0, %v1424_v5 }
 0x1d3   : > { %v2525_v22 = vpop.f32.mrf.mxu1 }
 0x1d4   : > { %v1539_v54 = vadd.f32 %v2525_v22, %v3192_v25 }
 0x1d5   : > { %v1530_v23 = vpop.f32.mrf.mxu1 }
 0x1d6   : > { %v1531_v45 = vadd.f32 %v3192_v25, %v1530_v23  ;;  %v1659_v31 = vmax.f32 %v1539_v54, 0.0 }
 0x1d7   : > { %v2526_v29 = vpop.f32.mrf.mxu1 }
 0x1d8   : > { %v1542_v13 = vadd.f32 %v2526_v29, %v3192_v25  ;;  %v1657_v30 = vmax.f32 %v1531_v45, 0.0 }
 0x1d9   : > { %v1533_v26 = vpop.f32.mrf.mxu1 }
 0x1da   : > { %v1534_v27 = vadd.f32 %v3192_v25, %v1533_v26  ;;  %v1660_v2 = vmax.f32 %v1542_v13, 0.0 }
 0x1db   : > { %v2529_v28 = vpop.f32.mrf.mxu1 }
 0x1dc   : > { %v1658_v18 = vmax.f32 %v1534_v27, 0.0  ;;  %v1690_v36 = vpack.c.bf16 %v1660_v2, %v1659_v31  ;;  %v1555_v39 = vadd.f32 %v2529_v28, %v3192_v25 }
 0x1dd   : > { %v1546_v32 = vpop.f32.mrf.mxu1 }
 0x1de   : > { %v1689_v34 = vpack.c.bf16 %v1658_v18, %v1657_v30  ;;  %v1547_v38 = vadd.f32 %v3192_v25, %v1546_v32  ;;  %v1663_v57 = vmax.f32 %v1555_v39, 0.0 }
 0x1df   : > { %v2530_v37 = vpop.f32.mrf.mxu1 }
 0x1e0   : > { %v1558_v19 = vadd.f32 %v2530_v37, %v3192_v25  ;;  %2559 = vmatprep.mubr.msk.bf16.mxu0 %vm461_vm0, %v1689_v34  ;;  %v1661_v43 = vmax.f32 %v1547_v38, 0.0 }
 0x1e1   : > { %v1549_v40 = vpop.f32.mrf.mxu1  ;;  %2560 = vmatmul.mubr.msk.bf16.vlgmr.msra.gmra.mxu0 %vm461_vm0, %v1690_v36 }
 0x1e2   : > { %v1550_v41 = vadd.f32 %v3192_v25, %v1549_v40  ;;  %v1664_v42 = vmax.f32 %v1558_v19, 0.0 }
 0x1e3   : > { %v2533_v46 = vpop.f32.mrf.mxu1 }
 0x1e4   : > { %v1662_v44 = vmax.f32 %v1550_v41, 0.0  ;;  %v1692_v48 = vpack.c.bf16 %v1664_v42, %v1663_v57  ;;  %v1571_v58 = vadd.f32 %v2533_v46, %v3192_v25 }
 0x1e5   : > { %v1562_v55 = vpop.f32.mrf.mxu1 }
 0x1e6   : > { %v1691_v47 = vpack.c.bf16 %v1662_v44, %v1661_v43  ;;  %v1563_v35 = vadd.f32 %v3192_v25, %v1562_v55  ;;  %v1667_v62 = vmax.f32 %v1571_v58, 0.0 }
 0x1e7   : > { %v2534_v56 = vpop.f32.mrf.mxu1 }
 0x1e8   : > { %2563 = vmatprep.mubr.msk.bf16.mxu0 %vm461_vm0, %v1691_v47  ;;  %v1574_v50 = vadd.f32 %v2534_v56, %v3192_v25  ;;  %v1665_v24 = vmax.f32 %v1563_v35, 0.0 }
 0x1e9   : > { %2564 = vmatmul.mubr.msk.bf16.gmra.mxu0 %vm461_vm0, %v1692_v48  ;;  %v1565_v61 = vpop.f32.mrf.mxu1 }
 0x1ea   : > { %v1566_v33 = vadd.f32 %v3192_v25, %v1565_v61  ;;  %v1668_v59 = vmax.f32 %v1574_v50, 0.0 }
 0x1eb   : > { %v2537_v60 = vpop.f32.mrf.mxu1 }
 0x1ec   : > { %v1666_v49 = vmax.f32 %v1566_v33, 0.0  ;;  %v1694_v3 = vpack.c.bf16 %v1668_v59, %v1667_v62  ;;  %v1587_v6 = vadd.f32 %v2537_v60, %v3192_v25 }
 0x1ed   : > { %v1578_v63 = vpop.f32.mrf.mxu1 }
 0x1ee   : > { %v1693_v0 = vpack.c.bf16 %v1666_v49, %v1665_v24  ;;  %v1579_v4 = vadd.f32 %v3192_v25, %v1578_v63  ;;  %v1671_v51 = vmax.f32 %v1587_v6, 0.0 }
 0x1ef   : > { %v2538_v1 = vpop.f32.mrf.mxu1 }
 0x1f0   : > { %v1590_v12 = vadd.f32 %v2538_v1, %v3192_v25  ;;  %2567 = vmatprep.mubr.msk.bf16.mxu0 %vm461_vm0, %v1693_v0  ;;  %v1669_v52 = vmax.f32 %v1579_v4, 0.0 }
 0x1f1   : > { %v1581_v7 = vpop.f32.mrf.mxu1  ;;  %2568 = vmatmul.mubr.msk.bf16.gmra.mxu0 %vm461_vm0, %v1694_v3 }
 0x1f2   : > { %v1582_v8 = vadd.f32 %v3192_v25, %v1581_v7  ;;  %v1672_v10 = vmax.f32 %v1590_v12, 0.0 }
 0x1f3   : > { %v2541_v11 = vpop.f32.mrf.mxu1 }
 0x1f4   : > { %v1670_v14 = vmax.f32 %v1582_v8, 0.0  ;;  %v1696_v53 = vpack.c.bf16 %v1672_v10, %v1671_v51  ;;  %v1603_v21 = vadd.f32 %v2541_v11, %v3192_v25  ;;  %v3245_v8 = vld [vmem:[%s3388_s9] sm:$0x1] }
 0x1f5   : > { %v1594_v15 = vpop.f32.mrf.mxu1  ;;  %2435 = vmatprep.mubr.msk.bf16.mxu1 %vm461_vm0, %v3245_v8 }
 0x1f6   : > { %v1695_v16 = vpack.c.bf16 %v1670_v14, %v1669_v52  ;;  %v1595_v9 = vadd.f32 %v3192_v25, %v1594_v15  ;;  %v1675_v54 = vmax.f32 %v1603_v21, 0.0 }
 0x1f7   : > { %v2542_v17 = vpop.f32.mrf.mxu1 }
 0x1f8   : > { %v1606_v20 = vadd.f32 %v2542_v17, %v3192_v25  ;;  %2571 = vmatprep.mubr.msk.bf16.mxu0 %vm461_vm0, %v1695_v16  ;;  %v1673_v45 = vmax.f32 %v1595_v9, 0.0 }
 0x1f9   : > { %v1597_v5 = vpop.f32.mrf.mxu1  ;;  %2572 = vmatmul.mubr.msk.bf16.gmra.mxu0 %vm461_vm0, %v1696_v53 }
 0x1fa   : > { %v1598_v22 = vadd.f32 %v3192_v25, %v1597_v5  ;;  %v1676_v23 = vmax.f32 %v1606_v20, 0.0 }
 0x1fb   : > { %v2545_v29 = vpop.f32.mrf.mxu1 }
 0x1fc   : > { %v1674_v13 = vmax.f32 %v1598_v22, 0.0  ;;  %v1698_v2 = vpack.c.bf16 %v1676_v23, %v1675_v54  ;;  %v1619_v31 = vadd.f32 %v2545_v29, %v3192_v25 }
 0x1fd   : > { %v1610_v26 = vpop.f32.mrf.mxu1 }
 0x1fe   : > { %v1697_v27 = vpack.c.bf16 %v1674_v13, %v1673_v45  ;;  %v1611_v30 = vadd.f32 %v3192_v25, %v1610_v26  ;;  %v1679_v39 = vmax.f32 %v1619_v31, 0.0 }
 0x1ff   : > { %v2546_v28 = vpop.f32.mrf.mxu1 }
 0x200   : > { %v1622_v18 = vadd.f32 %v2546_v28, %v3192_v25  ;;  %2575 = vmatprep.mubr.msk.bf16.mxu0 %vm461_vm0, %v1697_v27  ;;  %v1677_v38 = vmax.f32 %v1611_v30, 0.0 }
 0x201   : > { %v1613_v32 = vpop.f32.mrf.mxu1  ;;  %2576 = vmatmul.mubr.msk.bf16.gmra.mxu0 %vm461_vm0, %v1698_v2 }
 0x202   : > { %v1614_v34 = vadd.f32 %v3192_v25, %v1613_v32  ;;  %v1680_v36 = vmax.f32 %v1622_v18, 0.0 }
 0x203   : > { %v2549_v37 = vpop.f32.mrf.mxu1 }
 0x204   : > { %v1678_v19 = vmax.f32 %v1614_v34, 0.0  ;;  %v1700_v42 = vpack.c.bf16 %v1680_v36, %v1679_v39  ;;  %v1635_v57 = vadd.f32 %v2549_v37, %v3192_v25 }
 0x205   : > { %v1626_v40 = vpop.f32.mrf.mxu1 }
 0x206   : > { %v1699_v41 = vpack.c.bf16 %v1678_v19, %v1677_v38  ;;  %v1627_v44 = vadd.f32 %v3192_v25, %v1626_v40  ;;  %v1683_v58 = vmax.f32 %v1635_v57, 0.0 }
 0x207   : > { %v2550_v43 = vpop.f32.mrf.mxu1 }
 0x208   : > { %v1638_v46 = vadd.f32 %v2550_v43, %v3192_v25  ;;  %2579 = vmatprep.mubr.msk.bf16.mxu0 %vm461_vm0, %v1699_v41  ;;  %v1681_v35 = vmax.f32 %v1627_v44, 0.0 }
 0x209   : > { %v1629_v47 = vpop.f32.mrf.mxu1  ;;  %2580 = vmatmul.mubr.msk.bf16.gmra.mxu0 %vm461_vm0, %v1700_v42 }
 0x20a   : > { %v1630_v55 = vadd.f32 %v3192_v25, %v1629_v47  ;;  %v1684_v48 = vmax.f32 %v1638_v46, 0.0 }
 0x20b   : > { %v2553_v56 = vpop.f32.mrf.mxu1 }
 0x20c   : > { %v1682_v50 = vmax.f32 %v1630_v55, 0.0  ;;  %v1702_v59 = vpack.c.bf16 %v1684_v48, %v1683_v58  ;;  %v1651_v62 = vadd.f32 %v2553_v56, %v3192_v25 }
 0x20d   : > { %v1642_v61 = vpop.f32.mrf.mxu1 }
 0x20e   : > { %v1701_v33 = vpack.c.bf16 %v1682_v50, %v1681_v35  ;;  %v1643_v24 = vadd.f32 %v3192_v25, %v1642_v61  ;;  %v1687_v12 = vmax.f32 %v1651_v62, 0.0 }
 0x20f   : > { %v2554_v60 = vpop.f32.mrf.mxu1 }
 0x210   : > { %v1654_v49 = vadd.f32 %v2554_v60, %v3192_v25  ;;  %2583 = vmatprep.mubr.msk.bf16.mxu0 %vm461_vm0, %v1701_v33  ;;  %v1685_v1 = vmax.f32 %v1643_v24, 0.0 }
 0x211   : > { %v1645_v63 = vpop.f32.mrf.mxu1  ;;  %2584 = vmatmul.mubr.msk.bf16.gmra.mxu0 %vm461_vm0, %v1702_v59 }
 0x212   : > { %v1646_v0 = vadd.f32 %v3192_v25, %v1645_v63  ;;  %v1688_v3 = vmax.f32 %v1654_v49, 0.0  ;;  %v3252_v25 = vld [vmem:[%s3387_s8] ss:$0 sm:$0xff] }
 0x214   : > { %v1686_v4 = vmax.f32 %v1646_v0, 0.0  ;;  %v1704_v7 = vpack.c.bf16 %v1688_v3, %v1687_v12 }
 0x216   : > { %v1703_v6 = vpack.c.bf16 %v1686_v4, %v1685_v1 }
 0x218   : > { %2587 = vmatprep.mubr.msk.bf16.mxu0 %vm461_vm0, %v1703_v6 }
 0x219   : > { %2588 = vmatmul.mubr.msk.bf16.gmra.mxu0 %vm461_vm0, %v1704_v7 }
 0x2a1   : > { %v2561_v10 = vpop.f32.mrf.mxu0 }
 0x2a2   : > { %v1819_v52 = vadd.f32 %v2561_v10, %v3252_v25 }
 0x2a3   : > { %v1810_v11 = vpop.f32.mrf.mxu0 }
 0x2a4   : > { %v1811_v51 = vadd.f32 %v3252_v25, %v1810_v11  ;;  %v1939_v53 = vmax.f32 %v1819_v52, 0.0 }
 0x2a5   : > { %v2562_v14 = vpop.f32.mrf.mxu0 }
 0x2a6   : > { %v1822_v15 = vadd.f32 %v2562_v14, %v3252_v25  ;;  %v1937_v21 = vmax.f32 %v1811_v51, 0.0 }
 0x2a7   : > { %v1813_v16 = vpop.f32.mrf.mxu0 }
 0x2a8   : > { %v1940_v17 = vmax.f32 %v1822_v15, 0.0  ;;  %v1814_v9 = vadd.f32 %v3252_v25, %v1813_v16 }
 0x2a9   : > { %v2565_v20 = vpop.f32.mrf.mxu0 }
 0x2aa   : > { %v3258_v5 = vpack.c.bf16 %v1940_v17, %v1939_v53  ;;  %v1938_v22 = vmax.f32 %v1814_v9, 0.0  ;;  %v1835_v45 = vadd.f32 %v2565_v20, %v3252_v25 }
 0x2ab   : > { %v1826_v23 = vpop.f32.mrf.mxu0 }
 0x2ac   : > { %v3260_v29 = vpack.c.bf16 %v1938_v22, %v1937_v21  ;;  %v1827_v54 = vadd.f32 %v3252_v25, %v1826_v23  ;;  %v1943_v2 = vmax.f32 %v1835_v45, 0.0 }
 0x2ad   : > { %v2566_v13 = vpop.f32.mrf.mxu0 }
 0x2ae   : > { %v1838_v26 = vadd.f32 %v2566_v13, %v3252_v25  ;;  %v1941_v18 = vmax.f32 %v1827_v54, 0.0 }
 0x2af   : > { %v1829_v27 = vpop.f32.mrf.mxu0 }
 0x2b0   : > { %v1944_v28 = vmax.f32 %v1838_v26, 0.0  ;;  %v1830_v30 = vadd.f32 %v3252_v25, %v1829_v27 }
 0x2b1   : > { %v3268_v34 = vpop.f32.mrf.mxu0 }
 0x2b2   : > { %v3266_v31 = vpack.c.bf16 %v1944_v28, %v1943_v2  ;;  %v1942_v32 = vmax.f32 %v1830_v30, 0.0 }
 0x2b3   : > { %v3272_v37 = vpop.f32.mrf.mxu0 }
 0x2b4   : > { %v3270_v36 = vpack.c.bf16 %v1942_v32, %v1941_v18 }
 0x2b5   : > { %v2570_v38 = vpop.f32.mrf.mxu0 }
 0x2b6   : > { %v1854_v18 = vadd.f32 %v2570_v38, %v3252_v25 }
 0x2b7   : > { %v3274_v19 = vpop.f32.mrf.mxu0 }
 0x2b8   : > { %v1846_v38 = vadd.f32 %v3252_v25, %v3274_v19 }
 0x2b9   : > { %v2573_v39 = vpop.f32.mrf.mxu0 }
 0x2ba   : > { %v1867_v6 = vadd.f32 %v2573_v39, %v3252_v25 }
 0x2bb   : > { %v1858_v40 = vpop.f32.mrf.mxu0 }
 0x2bc   : > { %v1951_v14 = vmax.f32 %v1867_v6, 0.0  ;;  %v1859_v22 = vadd.f32 %v3252_v25, %v1858_v40  ;;  %v1851_v40 = vadd.f32 %v3268_v34, %v3252_v25  ;;  %v1843_v34 = vadd.f32 %v3252_v25, %v3272_v37 }
 0x2bd   : > { %v2574_v41 = vpop.f32.mrf.mxu0 }
 0x2be   : > { %v1870_v4 = vadd.f32 %v2574_v41, %v3252_v25  ;;  %v1949_v28 = vmax.f32 %v1859_v22, 0.0 }
 0x2bf   : > { %v1861_v42 = vpop.f32.mrf.mxu0 }
 0x2c0   : > { %v1952_v10 = vmax.f32 %v1870_v4, 0.0  ;;  %v1862_v16 = vadd.f32 %v3252_v25, %v1861_v42  ;;  %v1948_v42 = vmax.f32 %v1854_v18, 0.0 }
 0x2c1   : > { %v2577_v43 = vpop.f32.mrf.mxu0 }
 0x2c2   : > { %v1883_v46 = vadd.f32 %v2577_v43, %v3252_v25  ;;  %v1976_v17 = vpack.c.bf16 %v1952_v10, %v1951_v14  ;;  %v1950_v54 = vmax.f32 %v1862_v16, 0.0  ;;  %v2001_v10 = vsel %vm461_vm0, %v3266_v31, 0 }
 0x2c3   : > { %v1874_v44 = vpop.f32.mrf.mxu0  ;;  %v1992_v31 = vsel %vm461_vm0, %v3260_v29, 0 }
 0x2c4   : > { %v1875_v47 = vadd.f32 %v3252_v25, %v1874_v44  ;;  %v1955_v56 = vmax.f32 %v1883_v46, 0.0  ;;  %v2013_v2 = vsel %vm461_vm0, %v1976_v17, 0  ;;  %v1975_v32 = vpack.c.bf16 %v1950_v54, %v1949_v28 }
 0x2c5   : > { %v2578_v57 = vpop.f32.mrf.mxu0 }
 0x2c6   : > { %v1886_v55 = vadd.f32 %v2578_v57, %v3252_v25  ;;  %v1953_v61 = vmax.f32 %v1875_v47, 0.0  ;;  %v2010_v46 = vsel %vm461_vm0, %v1975_v32, 0  ;;  %v1947_v57 = vmax.f32 %v1851_v40, 0.0 }
 0x2c7   : > { %v1877_v48 = vpop.f32.mrf.mxu0 }
 0x2c8   : > { %v1956_v35 = vmax.f32 %v1886_v55, 0.0  ;;  %v1878_v50 = vadd.f32 %v3252_v25, %v1877_v48  ;;  %v1974_v55 = vpack.c.bf16 %v1948_v42, %v1947_v57 }
 0x2c9   : > { %v3280_v58 = vpop.f32.mrf.mxu0 }
 0x2ca   : > { %v3282_v33 = vpack.c.bf16 %v1956_v35, %v1955_v56  ;;  %v1954_v59 = vmax.f32 %v1878_v50, 0.0  ;;  %v1946_v35 = vmax.f32 %v1846_v38, 0.0 }
 0x2cb   : > { %v3284_v60 = vpop.f32.mrf.mxu0 }
 0x2cc   : > { %v3286_v24 = vpack.c.bf16 %v1954_v59, %v1953_v61  ;;  %v2007_v59 = vsel %vm461_vm0, %v1974_v55, 0 }
 0x2cd   : > { %v2582_v49 = vpop.f32.mrf.mxu0 }
 0x2ce   : > { %v1902_v50 = vadd.f32 %v2582_v49, %v3252_v25  ;;  %v1891_v49 = vadd.f32 %v3252_v25, %v3284_v60 }
 0x2cf   : > { %v3288_v62 = vpop.f32.mrf.mxu0 }
 0x2d0   : > { %v1960_v19 = vmax.f32 %v1902_v50, 0.0  ;;  %v1894_v37 = vadd.f32 %v3252_v25, %v3288_v62  ;;  %v1998_v62 = vsel %vm461_vm0, %v3270_v36, 0  ;;  %v1987_v36 = vstv %s1986_s14  ;;  %s2713_s14 = sshll.u32 %s2789_s13, 4  ;;  %s2714_s14 = int_to_ptr.vmem [resolvable:$false] %s2713_s14 }
 0x2d1   : > { %v2585_v63 = vpop.f32.mrf.mxu0  ;;  %s2715_s17 = scalar_lea.vmem %s2714_s14, 64  ;;  %p2716_p1 = scmp.lt.s32.totalorder %s2131_s10, %s2714_s14 }
 0x2d2   : > { %v1915_v30 = vadd.f32 %v2585_v63, %v3252_v25  ;;  %v1945_v63 = vmax.f32 %v1843_v34, 0.0  ;;  %v1958_v6 = vmax.f32 %v1894_v37, 0.0  ;;  %p2717_p2 = scmp.lt.s32.totalorder %s2715_s17, %s2709_s29 }
 0x2d3   : > { %v1906_v0 = vpop.f32.mrf.mxu0 }
 0x2d4   : > { %v1963_v41 = vmax.f32 %v1915_v30, 0.0  ;;  %v1907_v47 = vadd.f32 %v3252_v25, %v1906_v0  ;;  %v1899_v0 = vadd.f32 %v3280_v58, %v3252_v25  ;;  %p2718_p3 = por %p2717_p2, %p2716_p1 }
 0x2d5   : > { %v2586_v3 = vpop.f32.mrf.mxu0 }
 0x2d6   : > { %v1918_v26 = vadd.f32 %v2586_v3, %v3252_v25  ;;  %v1961_v56 = vmax.f32 %v1907_v47, 0.0  ;;  %v1973_v3 = vpack.c.bf16 %v1946_v35, %v1945_v63  ;;  %p2719_p5 = pnand %p2718_p3, %p2712_p0 }
 0x2d7   : > { %v1909_v1 = vpop.f32.mrf.mxu0 }
 0x2d8   : > { %v1964_v39 = vmax.f32 %v1918_v26, 0.0  ;;  %v1910_v44 = vadd.f32 %v3252_v25, %v1909_v1  ;;  %v1959_v1 = vmax.f32 %v1899_v0, 0.0 }
 0x2d9   : > { %v2589_v12 = vpop.f32.mrf.mxu0 }
 0x2da   : > { %v1931_v11 = vadd.f32 %v2589_v12, %v3252_v25  ;;  %v1982_v43 = vpack.c.bf16 %v1964_v39, %v1963_v41  ;;  %v1962_v48 = vmax.f32 %v1910_v44, 0.0  ;;  %v1980_v4 = vpack.c.bf16 %v1960_v19, %v1959_v1 }
 0x2db   : > { %v1922_v7 = vpop.f32.mrf.mxu0  ;;  %v2004_v12 = vsel %vm461_vm0, %v1973_v3, 0 }
 0x2dc   : > { %v1923_v51 = vadd.f32 %v3252_v25, %v1922_v7  ;;  %v1967_v9 = vmax.f32 %v1931_v11, 0.0  ;;  %v1981_v61 = vpack.c.bf16 %v1962_v48, %v1961_v56  ;;  %v1957_v7 = vmax.f32 %v1891_v49, 0.0 }
 0x2dd   : > { %v2590_v52 = vpop.f32.mrf.mxu0 }
 0x2de   : > { %v1934_v15 = vadd.f32 %v2590_v52, %v3252_v25  ;;  %v1965_v23 = vmax.f32 %v1923_v51, 0.0  ;;  %v1979_v58 = vpack.c.bf16 %v1958_v6, %v1957_v7 }
 0x2df   : > { %v1925_v53 = vpop.f32.mrf.mxu0 }
 0x2e0   : > { %v1968_v20 = vmax.f32 %v1934_v15, 0.0  ;;  %v1926_v21 = vadd.f32 %v3252_v25, %v1925_v53  ;;  %v1995_v25 = vsel %vm461_vm0, %v3258_v5, 0 }
 0x2e2   : > { %v1984_v45 = vpack.c.bf16 %v1968_v20, %v1967_v9  ;;  %v1966_v13 = vmax.f32 %v1926_v21, 0.0  ;;  %v2098_v9 = vlaneseq }
 0x2e4   : > { %v1983_v27 = vpack.c.bf16 %v1966_v13, %v1965_v23  ;;  %2592 = vmatprep.subr.msk.bf16.mxu1 %vm461_vm0, %v1984_v45  ;;  %v2099_v21 = vshrl.u32 %v2098_v9, 7  ;;  %vm2112_vm3 = vcmp.lt.s32.totalorder %v2098_v9, 256 }
 0x2e5   : > { %2420 = vmatpush3.bf16.xpose.msra.mxu1 %v2013_v2 }
 0x2e6   : > { %2593 = vmatprep.subr.msk.bf16.mxu1 %vm461_vm0, %v1983_v27 }
 0x2ed   : > { %2422 = vmatpush3.bf16.xpose.msra.mxu1 %v2010_v46 }
 0x2ee   : > { %2594 = vmatprep.subr.msk.bf16.mxu1 %vm461_vm0, %v1982_v43 }
 0x2f5   : > { %2424 = vmatpush3.bf16.xpose.msra.mxu1 %v2007_v59 }
 0x2f6   : > { %2595 = vmatprep.subr.msk.bf16.mxu1 %vm461_vm0, %v1981_v61 }
 0x2fd   : > { %2426 = vmatpush3.bf16.xpose.msra.mxu1 %v2004_v12 }
 0x2fe   : > { %2596 = vmatprep.subr.msk.bf16.mxu1 %vm461_vm0, %v1980_v4 }
 0x305   : > { %2428 = vmatpush3.bf16.xpose.msra.mxu1 %v2001_v10 }
 0x306   : > { %2597 = vmatprep.subr.msk.bf16.mxu1 %vm461_vm0, %v1979_v58 }
 0x30d   : > { %2430 = vmatpush3.bf16.xpose.msra.mxu1 %v1998_v62 }
 0x30e   : > { %2598 = vmatprep.subr.msk.bf16.mxu1 %vm461_vm0, %v3282_v33 }
 0x315   : > { %2432 = vmatpush3.bf16.xpose.msra.mxu1 %v1995_v25 }
 0x316   : > { %2599 = vmatprep.subr.msk.bf16.mxu1 %vm461_vm0, %v3286_v24 }
 0x31d   : > { %2434 = vmatpush3.bf16.xpose.msra.mxu1 %v1992_v31 }
 0x324   : > { %2436 = vmatmul.mubr.msk.bf16.vlgmr.msra.gmra.mxu1 %vm461_vm0, %v3245_v8  ;;  %v2788_v8 = vmov 1966171168  }
 0x325   : > { %v2096_v17 = vunpack.c.l.s4 %v2788_v8 }
 0x327   : > { %v2097_v20 = vunpack.c.0.s8 %v2096_v17 }
 0x329   : > { %v2100_v23 = vsub.s32 %v2097_v20, %v2099_v21 }
 0x3e4   : > { %v2073_v60 = vpop.f32.mrf.mxu1 }
 0x3e5   : > { %v2074_v11 = vadd.f32 %v2073_v60, %v1987_v36 }
 0x3e6   : > { %v2075_v52 = vpop.f32.mrf.mxu1 }
 0x3e7   : > { %v2334_v33 = vmul.f32 -1.442695, %v2074_v11  ;;  %v2076_v14 = vadd.f32 %v2075_v52, %v1987_v36 }
 0x3e8   : > { %v2077_v5 = vpop.f32.mrf.mxu1 }
 0x3e9   : > { %2701 = vpow2.f32 %v2334_v33  ;;  %v2335_v51 = vmul.f32 -1.442695, %v2076_v14 }
 0x3ea   : > { %v2078_v15 = vpop.f32.mrf.mxu1 }
 0x3eb   : > { %2703 = vpow2.f32 %v2335_v51 }
 0x3f6   : > { %v2702_v24 = vpop.eup %2701 }
 0x3f7   : > { %v2086_v16 = vadd.f32 1.0, %v2702_v24 }
 0x3f8   : > { %v2704_v29 = vpop.eup %2703 }
 0x3f9   : > { %v2087_v53 = vadd.f32 1.0, %v2704_v29  ;;  %2705 = vrcp.f32 %v2086_v16 }
 0x3fb   : > { %2707 = vrcp.f32 %v2087_v53 }
 0x406   : > { %v2706_v22 = vpop.eup %2705 }
 0x408   : > { %v2708_v45 = vpop.eup %2707 }
 0x409   : > { %v2094_v13 = vcombine.low %v2706_v22, %v2708_v45 }
 0x40b   : > { %v2101_v54 = vrot.slane %v2094_v13, %v2100_v23 }
 0x40d   : > { %v2108_v26 = vrot.slane %v2101_v54, %v2100_v23 }
 0x40f   : > { %2114 = vst.msk [vmem:[%s433_s22] sm:$0x3] %vm2112_vm3, %v2108_v26 }
 0x410   : > { %2722 = shalt.err (!%p2719_p5)
}
 0x411   : > { %s2723_s0 = scalar_lea.hbm %s2128_s25, 32  ;;  %s2727_s22 = scalar_lea.hbm %s3390_s11, 64 }
 0x412   : > { %p2724_p6 = scmp.ne.s32.totalorder %s2128_s25, %s2723_s0  ;;  %p2728_p10 = scmp.lt.s32.totalorder %s2128_s25, %s3390_s11 }
 0x413   : > { %p2729_p11 = scmp.lt.s32.totalorder %s2727_s22, %s2723_s0 }
 0x414   : > { %p2725_p7 = pnand %p2724_p6, %p2891_p4 }
 0x415   : > { %p2730_p12 = por %p2729_p11, %p2728_p10 }
 0x416   : > { %p2726_p9 = pneg %p2725_p7 }
 0x418   : > { %p2731_p13 = pnand %p2730_p12, %p2726_p9 }
 0x41a   : > { %2734 = shalt.err (!%p2731_p13)
}
 0x41b   : > { %2600 = dma.vmem_to_hbm [thread:$0]  (%p2891_p4), %s2131_s10, 32, %s2128_s25, %s2116_s27  }
 0x41c PF: > { %p2606_p0 = scmp.ge.s32.totalorder %s2785_s24, 2  ;;  %s2142_s29 = sand.u32 1, %s2765_s19  }
 0x41d   : > { %s2143_s13 = scalar_lea.sflag [#allocation5], %s2142_s29 }
 0x41e   : > { %p2603_p1 = pnand %p2606_p0, %p2898_p8 }
 0x420   : > { %p2604_p2 = pneg %p2603_p1 }
 0x422   : > { %2760 = dma.done.wait (%p2604_p2), %s2143_s13, 32  }
 0x423   : > { %2762 = vsyncadd (%p2604_p2), %s2143_s13, 4294967264  ;;  %s25_s24 = sadd.s32 1, %s2785_s24   ;;  %s3397_s0 = sld [smem:[#allocation7_spill]] }
 0x424   : > { %p22_p3 = scmp.ge.s32.totalorder %s25_s24, 4   ;;  %s3398_s19 = smov %s2769_s20 }
 0x425   : > { %s3399_s20 = smov %s2773_s21  ;;  %s3400_s21 = smov %s2904_s12 }
 0x426   : > { %s3401_s22 = smov %s2781_s23  ;;  %24 = sbr.rel (!%p22_p3) target bundleno = 7 (0x7), region = 113 }
 0x429   : > { %s3402_s23 = smov %s3397_s0 }
 0x42b   :  { %2148 = vsyncpa [#allocation5], 1 }
 0x42c   :  { %2150 = vsyncpa [#allocation5 + $0x1], 1 }

</bundles_post_ra>
